<compile_context>
chip_gen: v7x
topology: tpu7x:2x2x1
jax: 0.10.0
libtpu: 0.0.40
codegen_flags: <defaults>
</compile_context>

<pallas_src>
import functools

import jax
import jax.numpy as jnp
from jax.experimental import pallas as pl
from jax.experimental.pallas import tpu as pltpu

PART = 6
BN_EPS = 1e-5


def _rpp_kernel(x_ref, w_ref, a_ref, b_ref, out_ref, acc_ref, *,
                inv_s, num_parts):
    # x_ref  : (1, C, S_t)  activations (channels on sublanes, pixels on lanes)
    # w_ref  : (P, C)       1x1 conv weight
    # a_ref  : (C, 1)       folded BN scale  = gamma / sqrt(var + eps)
    # b_ref  : (C, 1)       folded BN shift  = beta - mean * scale
    # out_ref: (1, C, P)    per-part channel means
    # acc_ref: (C, P) f32   spatial-sum accumulator across S tiles
    s_idx = pl.program_id(1)

    @pl.when(s_idx == 0)
    def _init():
        acc_ref[...] = jnp.zeros_like(acc_ref)

    x = x_ref[0]                                            # (C, S_t)
    cdt = x.dtype

    # 1x1 conv == per-pixel matmul on the MXU: (P, C) @ (C, S_t) -> (P, S_t).
    logits = jnp.dot(w_ref[...].astype(cdt), x,
                     preferred_element_type=jnp.float32)

    # Softmax over the part dimension (axis 0, size P); stats kept in f32.
    # approx reciprocal goes to the EUP slot instead of a Newton loop on VALU.
    m = jnp.max(logits, axis=0, keepdims=True)              # (1, S_t)
    e = jnp.exp(logits - m)
    p = (e * pl.reciprocal(jnp.sum(e, axis=0, keepdims=True),
                           approx=True)).astype(cdt)        # (P, S_t)

    # Hoist the BN scale multiply and the shift broadcast out of the part loop:
    #   relu(BN(x * p_i)) == relu((x * a) * p_i + b)
    xa = x * a_ref[...].astype(cdt)                          # (C, S_t), once
    bb = jnp.broadcast_to(b_ref[...].astype(cdt), xa.shape)  # (C, S_t), once

    # Per-part spatial pooling on the (otherwise idle) MXU: sel_i is a
    # (S_t, P) selector whose column i is all-ones, so r_i @ sel_i drops the
    # row-sum over S_t of part i straight into column i of a (C, P) block.
    eye_p = jnp.eye(num_parts, dtype=cdt)                    # trace-time const
    acc = jnp.zeros((xa.shape[0], num_parts), jnp.float32)   # (C, P) f32
    for i in range(num_parts):                               # static unroll, P=6
        r = jnp.maximum(xa * p[i:i + 1, :] + bb, 0)          # (C, S_t)
        sel = jnp.broadcast_to(eye_p[i:i + 1, :],
                               (xa.shape[1], num_parts))     # (S_t, P)
        acc = acc + jnp.dot(r, sel, preferred_element_type=jnp.float32)
    acc_ref[...] += acc

    @pl.when(s_idx == pl.num_programs(1) - 1)
    def _finalize():
        out_ref[0] = (acc_ref[...] * inv_s).astype(out_ref.dtype)


def _pick_s_tile(S, C, itemsize, max_block_bytes=2 << 20):
    """Largest S tile (a multiple of 128 dividing S, or S itself) whose
    (C, S_t) block stays under the per-buffer VMEM budget (Pallas
    double-buffers the input block)."""
    if S * C * itemsize <= max_block_bytes:
        return S
    best = None
    t = 128
    while t < S:
        if S % t == 0 and t * C * itemsize <= max_block_bytes:
            best = t
        t += 128
    return best if best is not None else S


def rpp_forward(x_nchw, conv_w, bn_gamma, bn_beta, bn_mean, bn_var,
                *, compute_dtype=jnp.float32):
    """x_nchw: (N, C, H, W).  Returns f: (N, C, 6, 1) float32.

    compute_dtype: dtype of the element-wise part chain.  jnp.bfloat16 is
    recommended on v6e/v7x (bf16 VALUs, half the HBM bytes for x); keep the
    float32 default on v5e (no bf16 VALU there).  Softmax statistics and the
    pooled accumulation always stay in float32.
    """
    N, C, H, W = x_nchw.shape
    S = H * W

    # ---- glue: layout (free reshape of NCHW, no transpose) + BN folding ----
    x = x_nchw.reshape(N, C, S).astype(compute_dtype)        # (N, C, S)
    w = conv_w.reshape(PART, C).astype(jnp.float32)          # (P, C), lane-dense C
    scale = bn_gamma * jax.lax.rsqrt(bn_var + BN_EPS)        # (C,)
    shift = bn_beta - bn_mean * scale                        # (C,)
    a = scale.reshape(C, 1).astype(jnp.float32)
    b = shift.reshape(C, 1).astype(jnp.float32)

    s_tile = _pick_s_tile(S, C, jnp.dtype(compute_dtype).itemsize)
    n_s = S // s_tile

    kernel = functools.partial(_rpp_kernel, inv_s=1.0 / S, num_parts=PART)

    # Note: with grid=(N, n_s) only the N axis is "parallel"; at N==1 one of
    # v7x's two TensorCores idles — batch >=2 per call when possible.
    out = pl.pallas_call(
        kernel,
        out_shape=jax.ShapeDtypeStruct((N, C, PART), jnp.float32),
        grid_spec=pltpu.PrefetchScalarGridSpec(
            num_scalar_prefetch=0,
            grid=(N, n_s),
            in_specs=[
                pl.BlockSpec((1, C, s_tile), lambda n, s: (n, 0, s)),
                pl.BlockSpec((PART, C), lambda n, s: (0, 0)),
                pl.BlockSpec((C, 1), lambda n, s: (0, 0)),
                pl.BlockSpec((C, 1), lambda n, s: (0, 0)),
            ],
            out_specs=pl.BlockSpec((1, C, PART), lambda n, s: (n, 0, 0)),
            scratch_shapes=[pltpu.VMEM((C, PART), jnp.float32)],
        ),
        compiler_params=pltpu.CompilerParams(
            dimension_semantics=("parallel", "arbitrary")),
    )(x, w, a, b)                                            # (N, C, P)

    # cat along dim=2 of (N, C, 1, 1) blocks -> (N, C, 6, 1): free reshape.
    return out[..., None]


def _reference(x_nchw, conv_w, bn_gamma, bn_beta, bn_mean, bn_var):
    """Pure-JAX reference of the same forward pass (BN eval mode)."""
    N, C, H, W = x_nchw.shape
    w = conv_w.reshape(PART, C)                              # (P, C)
    logits = jnp.einsum("nchw,pc->nphw", x_nchw, w)
    p = jax.nn.softmax(logits, axis=1)                       # (N, P, H, W)
    scale = bn_gamma * jax.lax.rsqrt(bn_var + BN_EPS)
    shift = bn_beta - bn_mean * scale
    ys = []
    for i in range(PART):
        t = x_nchw * p[:, i:i + 1]                           # (N, C, H, W)
        bn = t * scale[None, :, None, None] + shift[None, :, None, None]
        r = jnp.maximum(bn, 0.0)
        ys.append(jnp.mean(r, axis=(2, 3))[:, :, None, None])  # (N, C, 1, 1)
    return jnp.concatenate(ys, axis=2)                       # (N, C, 6, 1)


if __name__ == "__main__":
    # Small shapes consistent with the module (module hardcodes C=2048;
    # reduced here to keep the example small while staying tile-aligned).
    N, C, H, W = 2, 256, 8, 8

    key = jax.random.PRNGKey(0)
    k_x, k_w = jax.random.split(key)

    x = jax.random.normal(k_x, (N, C, H, W), dtype=jnp.float32)

    # Conv2d(C, 6, 1, bias=False) weight, kaiming_normal fan_out/relu:
    # fan_out = out_channels * kH * kW = 6 -> std = sqrt(2/6)
    conv_w = jax.random.normal(k_w, (PART, C, 1, 1), dtype=jnp.float32) * jnp.sqrt(2.0 / PART)

    # BatchNorm2d(C): weights_init_kaiming -> gamma=1, beta=0; PyTorch default
    # running stats: mean=0, var=1 (inference mode).
    bn_gamma = jnp.ones((C,), jnp.float32)
    bn_beta = jnp.zeros((C,), jnp.float32)
    bn_mean = jnp.zeros((C,), jnp.float32)
    bn_var = jnp.ones((C,), jnp.float32)

    f = rpp_forward(x, conv_w, bn_gamma, bn_beta, bn_mean, bn_var)
    f = jax.block_until_ready(f)

    ref = _reference(x, conv_w, bn_gamma, bn_beta, bn_mean, bn_var)
    assert f.shape == (N, C, PART, 1), f.shape
    # approx=True softmax reciprocal relaxes normalization to ~1e-3 relative,
    # hence the slightly looser tolerance vs the pure-f32 reference.
    assert jnp.allclose(f, ref, atol=2e-3, rtol=2e-3), "mismatch vs reference"

    print("KERNEL_OK")
</pallas_src>

<mosaic_0001>
module attributes {stable_mosaic.version = 11 : i64} {
  func.func @_rpp_kernel(%arg0: i32, %arg1: i32, %arg2: memref<1x256x64xf32, #tpu.memory_space<vmem>>, %arg3: memref<6x256xf32, #tpu.memory_space<vmem>>, %arg4: memref<256x1xf32, #tpu.memory_space<vmem>>, %arg5: memref<256x1xf32, #tpu.memory_space<vmem>>, %arg6: memref<1x256x6xf32, #tpu.memory_space<vmem>>, %arg7: memref<256x6xf32, #tpu.memory_space<vmem>>) attributes {dimension_semantics = [#tpu.dimension_semantics<parallel>, #tpu.dimension_semantics<arbitrary>], iteration_bounds = array<i64: 2, 1>, scalar_prefetch = 0 : i64, scratch_operands = 1 : i64, tpu.core_type = #tpu.core_type<tc>, window_params = [{transform_indices = @transform_0, window_bounds = array<i64: 1, 256, 64>}, {pipeline_mode = #tpu.pipeline_mode<synchronous>, transform_indices = @transform_1, window_bounds = array<i64: 6, 256>}, {pipeline_mode = #tpu.pipeline_mode<synchronous>, transform_indices = @transform_2, window_bounds = array<i64: 256, 1>}, {pipeline_mode = #tpu.pipeline_mode<synchronous>, transform_indices = @transform_3, window_bounds = array<i64: 256, 1>}, {transform_indices = @transform_4, window_bounds = array<i64: 1, 256, 6>}]} {
    %c0_i32 = arith.constant 0 : i32
    %0 = arith.cmpi eq, %arg1, %c0_i32 : i32
    %1 = arith.extui %0 : i1 to i32
    %c0_i32_0 = arith.constant 0 : i32
    %2 = arith.cmpi ne, %1, %c0_i32_0 : i32
    scf.if %2 {
      %cst_31 = arith.constant 0.000000e+00 : f32
      %103 = vector.broadcast %cst_31 : f32 to vector<256x6xf32>
      %c0_32 = arith.constant 0 : index
      %c0_33 = arith.constant 0 : index
      %104 = vector.load %arg7[%c0_32, %c0_33] : memref<256x6xf32, #tpu.memory_space<vmem>>, vector<256x6xf32>
      tpu.vector_store %arg7[%c0_32, %c0_33], %103 {strides = array<i32>} : memref<256x6xf32, #tpu.memory_space<vmem>>, vector<256x6xf32>,
    } else {
    }
    %c0 = arith.constant 0 : index
    %c0_1 = arith.constant 0 : index
    %c0_2 = arith.constant 0 : index
    %3 = vector.load %arg2[%c0, %c0_1, %c0_2] : memref<1x256x64xf32, #tpu.memory_space<vmem>>, vector<1x256x64xf32>
    %4 = vector.shape_cast %3 : vector<1x256x64xf32> to vector<256x64xf32>
    %c0_3 = arith.constant 0 : index
    %c0_4 = arith.constant 0 : index
    %5 = vector.load %arg3[%c0_3, %c0_4] : memref<6x256xf32, #tpu.memory_space<vmem>>, vector<6x256xf32>
    %cst = arith.constant dense<0.000000e+00> : vector<6x64xf32>
    %6 = tpu.matmul %5, %4, %cst {dimension_numbers = #tpu.dot_dimension_numbers<[1], [0], [0], [1], [0, 0, 1, 1], [], []>} : vector<6x256xf32>, vector<256x64xf32>, vector<6x64xf32> -> vector<6x64xf32>
    %cst_5 = arith.constant dense<0xFF800000> : vector<64xf32>
    %7 = vector.multi_reduction <maximumf>, %6, %cst_5 [0] : vector<6x64xf32> to vector<64xf32>
    %8 = vector.shape_cast %7 : vector<64xf32> to vector<1x64xf32>
    %9 = vector.broadcast %8 : vector<1x64xf32> to vector<6x64xf32>
    %10 = arith.subf %6, %9 : vector<6x64xf32>
    %11 = math.exp %10 : vector<6x64xf32>
    %cst_6 = arith.constant dense<0.000000e+00> : vector<64xf32>
    %12 = vector.multi_reduction <add>, %11, %cst_6 [0] : vector<6x64xf32> to vector<64xf32>
    %13 = vector.shape_cast %12 : vector<64xf32> to vector<1x64xf32>
    %14 = tpu.reciprocal %13 {approx = true} : vector<1x64xf32> -> vector<1x64xf32>
    %15 = vector.broadcast %14 : vector<1x64xf32> to vector<6x64xf32>
    %16 = arith.mulf %11, %15 : vector<6x64xf32>
    %c0_7 = arith.constant 0 : index
    %c0_8 = arith.constant 0 : index
    %17 = vector.load %arg4[%c0_7, %c0_8] : memref<256x1xf32, #tpu.memory_space<vmem>>, vector<256x1xf32>
    %18 = vector.broadcast %17 : vector<256x1xf32> to vector<256x64xf32>
    %19 = arith.mulf %4, %18 : vector<256x64xf32>
    %c0_9 = arith.constant 0 : index
    %c0_10 = arith.constant 0 : index
    %20 = vector.load %arg5[%c0_9, %c0_10] : memref<256x1xf32, #tpu.memory_space<vmem>>, vector<256x1xf32>
    %21 = vector.shape_cast %20 : vector<256x1xf32> to vector<256x1xf32>
    %22 = vector.broadcast %21 : vector<256x1xf32> to vector<256x64xf32>
    %23 = tpu.iota {dimensions = array<i32: 0>} : vector<6x6xi32>
    %24 = tpu.iota {dimensions = array<i32: 1>} : vector<6x6xi32>
    %c0_i32_11 = arith.constant 0 : i32
    %25 = vector.broadcast %c0_i32_11 : i32 to vector<6x6xi32>
    %26 = arith.addi %23, %25 : vector<6x6xi32>
    %27 = arith.cmpi eq, %26, %24 : vector<6x6xi32>
    %28 = arith.extui %27 : vector<6x6xi1> to vector<6x6xi32>
    %29 = arith.sitofp %28 : vector<6x6xi32> to vector<6x6xf32>
    %cst_12 = arith.constant 0.000000e+00 : f32
    %30 = vector.broadcast %cst_12 : f32 to vector<256x6xf32>
    %31 = vector.extract_strided_slice %16 {offsets = [0, 0], sizes = [1, 64], strides = [1, 1]} : vector<6x64xf32> to vector<1x64xf32>
    %32 = vector.broadcast %31 : vector<1x64xf32> to vector<256x64xf32>
    %33 = arith.mulf %19, %32 : vector<256x64xf32>
    %34 = arith.addf %33, %22 : vector<256x64xf32>
    %cst_13 = arith.constant 0.000000e+00 : f32
    %35 = vector.broadcast %cst_13 : f32 to vector<256x64xf32>
    %36 = arith.maximumf %34, %35 : vector<256x64xf32>
    %37 = vector.extract_strided_slice %29 {offsets = [0, 0], sizes = [1, 6], strides = [1, 1]} : vector<6x6xf32> to vector<1x6xf32>
    %38 = vector.shape_cast %37 : vector<1x6xf32> to vector<1x6xf32>
    %39 = vector.broadcast %38 : vector<1x6xf32> to vector<64x6xf32>
    %cst_14 = arith.constant dense<0.000000e+00> : vector<256x6xf32>
    %40 = tpu.matmul %36, %39, %cst_14 {dimension_numbers = #tpu.dot_dimension_numbers<[1], [0], [0], [1], [0, 0, 1, 1], [], []>} : vector<256x64xf32>, vector<64x6xf32>, vector<256x6xf32> -> vector<256x6xf32>
    %41 = arith.addf %30, %40 : vector<256x6xf32>
    %42 = vector.extract_strided_slice %16 {offsets = [1, 0], sizes = [1, 64], strides = [1, 1]} : vector<6x64xf32> to vector<1x64xf32>
    %43 = vector.broadcast %42 : vector<1x64xf32> to vector<256x64xf32>
    %44 = arith.mulf %19, %43 : vector<256x64xf32>
    %45 = arith.addf %44, %22 : vector<256x64xf32>
    %cst_15 = arith.constant 0.000000e+00 : f32
    %46 = vector.broadcast %cst_15 : f32 to vector<256x64xf32>
    %47 = arith.maximumf %45, %46 : vector<256x64xf32>
    %48 = vector.extract_strided_slice %29 {offsets = [1, 0], sizes = [1, 6], strides = [1, 1]} : vector<6x6xf32> to vector<1x6xf32>
    %49 = vector.shape_cast %48 : vector<1x6xf32> to vector<1x6xf32>
    %50 = vector.broadcast %49 : vector<1x6xf32> to vector<64x6xf32>
    %cst_16 = arith.constant dense<0.000000e+00> : vector<256x6xf32>
    %51 = tpu.matmul %47, %50, %cst_16 {dimension_numbers = #tpu.dot_dimension_numbers<[1], [0], [0], [1], [0, 0, 1, 1], [], []>} : vector<256x64xf32>, vector<64x6xf32>, vector<256x6xf32> -> vector<256x6xf32>
    %52 = arith.addf %41, %51 : vector<256x6xf32>
    %53 = vector.extract_strided_slice %16 {offsets = [2, 0], sizes = [1, 64], strides = [1, 1]} : vector<6x64xf32> to vector<1x64xf32>
    %54 = vector.broadcast %53 : vector<1x64xf32> to vector<256x64xf32>
    %55 = arith.mulf %19, %54 : vector<256x64xf32>
    %56 = arith.addf %55, %22 : vector<256x64xf32>
    %cst_17 = arith.constant 0.000000e+00 : f32
    %57 = vector.broadcast %cst_17 : f32 to vector<256x64xf32>
    %58 = arith.maximumf %56, %57 : vector<256x64xf32>
    %59 = vector.extract_strided_slice %29 {offsets = [2, 0], sizes = [1, 6], strides = [1, 1]} : vector<6x6xf32> to vector<1x6xf32>
    %60 = vector.shape_cast %59 : vector<1x6xf32> to vector<1x6xf32>
    %61 = vector.broadcast %60 : vector<1x6xf32> to vector<64x6xf32>
    %cst_18 = arith.constant dense<0.000000e+00> : vector<256x6xf32>
    %62 = tpu.matmul %58, %61, %cst_18 {dimension_numbers = #tpu.dot_dimension_numbers<[1], [0], [0], [1], [0, 0, 1, 1], [], []>} : vector<256x64xf32>, vector<64x6xf32>, vector<256x6xf32> -> vector<256x6xf32>
    %63 = arith.addf %52, %62 : vector<256x6xf32>
    %64 = vector.extract_strided_slice %16 {offsets = [3, 0], sizes = [1, 64], strides = [1, 1]} : vector<6x64xf32> to vector<1x64xf32>
    %65 = vector.broadcast %64 : vector<1x64xf32> to vector<256x64xf32>
    %66 = arith.mulf %19, %65 : vector<256x64xf32>
    %67 = arith.addf %66, %22 : vector<256x64xf32>
    %cst_19 = arith.constant 0.000000e+00 : f32
    %68 = vector.broadcast %cst_19 : f32 to vector<256x64xf32>
    %69 = arith.maximumf %67, %68 : vector<256x64xf32>
    %70 = vector.extract_strided_slice %29 {offsets = [3, 0], sizes = [1, 6], strides = [1, 1]} : vector<6x6xf32> to vector<1x6xf32>
    %71 = vector.shape_cast %70 : vector<1x6xf32> to vector<1x6xf32>
    %72 = vector.broadcast %71 : vector<1x6xf32> to vector<64x6xf32>
    %cst_20 = arith.constant dense<0.000000e+00> : vector<256x6xf32>
    %73 = tpu.matmul %69, %72, %cst_20 {dimension_numbers = #tpu.dot_dimension_numbers<[1], [0], [0], [1], [0, 0, 1, 1], [], []>} : vector<256x64xf32>, vector<64x6xf32>, vector<256x6xf32> -> vector<256x6xf32>
    %74 = arith.addf %63, %73 : vector<256x6xf32>
    %75 = vector.extract_strided_slice %16 {offsets = [4, 0], sizes = [1, 64], strides = [1, 1]} : vector<6x64xf32> to vector<1x64xf32>
    %76 = vector.broadcast %75 : vector<1x64xf32> to vector<256x64xf32>
    %77 = arith.mulf %19, %76 : vector<256x64xf32>
    %78 = arith.addf %77, %22 : vector<256x64xf32>
    %cst_21 = arith.constant 0.000000e+00 : f32
    %79 = vector.broadcast %cst_21 : f32 to vector<256x64xf32>
    %80 = arith.maximumf %78, %79 : vector<256x64xf32>
    %81 = vector.extract_strided_slice %29 {offsets = [4, 0], sizes = [1, 6], strides = [1, 1]} : vector<6x6xf32> to vector<1x6xf32>
    %82 = vector.shape_cast %81 : vector<1x6xf32> to vector<1x6xf32>
    %83 = vector.broadcast %82 : vector<1x6xf32> to vector<64x6xf32>
    %cst_22 = arith.constant dense<0.000000e+00> : vector<256x6xf32>
    %84 = tpu.matmul %80, %83, %cst_22 {dimension_numbers = #tpu.dot_dimension_numbers<[1], [0], [0], [1], [0, 0, 1, 1], [], []>} : vector<256x64xf32>, vector<64x6xf32>, vector<256x6xf32> -> vector<256x6xf32>
    %85 = arith.addf %74, %84 : vector<256x6xf32>
    %86 = vector.extract_strided_slice %16 {offsets = [5, 0], sizes = [1, 64], strides = [1, 1]} : vector<6x64xf32> to vector<1x64xf32>
    %87 = vector.broadcast %86 : vector<1x64xf32> to vector<256x64xf32>
    %88 = arith.mulf %19, %87 : vector<256x64xf32>
    %89 = arith.addf %88, %22 : vector<256x64xf32>
    %cst_23 = arith.constant 0.000000e+00 : f32
    %90 = vector.broadcast %cst_23 : f32 to vector<256x64xf32>
    %91 = arith.maximumf %89, %90 : vector<256x64xf32>
    %92 = vector.extract_strided_slice %29 {offsets = [5, 0], sizes = [1, 6], strides = [1, 1]} : vector<6x6xf32> to vector<1x6xf32>
    %93 = vector.shape_cast %92 : vector<1x6xf32> to vector<1x6xf32>
    %94 = vector.broadcast %93 : vector<1x6xf32> to vector<64x6xf32>
    %cst_24 = arith.constant dense<0.000000e+00> : vector<256x6xf32>
    %95 = tpu.matmul %91, %94, %cst_24 {dimension_numbers = #tpu.dot_dimension_numbers<[1], [0], [0], [1], [0, 0, 1, 1], [], []>} : vector<256x64xf32>, vector<64x6xf32>, vector<256x6xf32> -> vector<256x6xf32>
    %96 = arith.addf %85, %95 : vector<256x6xf32>
    %c0_25 = arith.constant 0 : index
    %c0_26 = arith.constant 0 : index
    %97 = vector.load %arg7[%c0_25, %c0_26] : memref<256x6xf32, #tpu.memory_space<vmem>>, vector<256x6xf32>
    %98 = arith.addf %97, %96 : vector<256x6xf32>
    %c0_27 = arith.constant 0 : index
    %c0_28 = arith.constant 0 : index
    %99 = vector.load %arg7[%c0_27, %c0_28] : memref<256x6xf32, #tpu.memory_space<vmem>>, vector<256x6xf32>
    tpu.vector_store %arg7[%c0_27, %c0_28], %98 {strides = array<i32>} : memref<256x6xf32, #tpu.memory_space<vmem>>, vector<256x6xf32>,
    %c0_i32_29 = arith.constant 0 : i32
    %100 = arith.cmpi eq, %arg1, %c0_i32_29 : i32
    %101 = arith.extui %100 : i1 to i32
    %c0_i32_30 = arith.constant 0 : i32
    %102 = arith.cmpi ne, %101, %c0_i32_30 : i32
    scf.if %102 {
      %c0_31 = arith.constant 0 : index
      %c0_32 = arith.constant 0 : index
      %103 = vector.load %arg7[%c0_31, %c0_32] : memref<256x6xf32, #tpu.memory_space<vmem>>, vector<256x6xf32>
      %cst_33 = arith.constant 1.562500e-02 : f32
      %104 = vector.broadcast %cst_33 : f32 to vector<256x6xf32>
      %105 = arith.mulf %103, %104 : vector<256x6xf32>
      %c0_34 = arith.constant 0 : index
      %c0_35 = arith.constant 0 : index
      %c0_36 = arith.constant 0 : index
      %106 = vector.load %arg6[%c0_34, %c0_35, %c0_36] : memref<1x256x6xf32, #tpu.memory_space<vmem>>, vector<1x256x6xf32>
      %107 = vector.shape_cast %106 : vector<1x256x6xf32> to vector<256x6xf32>
      %108 = vector.shape_cast %105 : vector<256x6xf32> to vector<1x256x6xf32>
      tpu.vector_store %arg6[%c0_34, %c0_35, %c0_36], %108 {strides = array<i32>} : memref<1x256x6xf32, #tpu.memory_space<vmem>>, vector<1x256x6xf32>,
    } else {
    }
    return
  }
  func.func @transform_0(%arg0: i32, %arg1: i32) -> (i32, i32, i32) {
    %c0_i32 = arith.constant 0 : i32
    %c0_i32_0 = arith.constant 0 : i32
    return %arg0, %c0_i32, %arg1 : i32, i32, i32
  }
  func.func @transform_1(%arg0: i32, %arg1: i32) -> (i32, i32) {
    %c0_i32 = arith.constant 0 : i32
    %c0_i32_0 = arith.constant 0 : i32
    %c0_i32_1 = arith.constant 0 : i32
    return %c0_i32, %c0_i32_0 : i32, i32
  }
  func.func @transform_2(%arg0: i32, %arg1: i32) -> (i32, i32) {
    %c0_i32 = arith.constant 0 : i32
    %c0_i32_0 = arith.constant 0 : i32
    %c0_i32_1 = arith.constant 0 : i32
    return %c0_i32, %c0_i32_0 : i32, i32
  }
  func.func @transform_3(%arg0: i32, %arg1: i32) -> (i32, i32) {
    %c0_i32 = arith.constant 0 : i32
    %c0_i32_0 = arith.constant 0 : i32
    %c0_i32_1 = arith.constant 0 : i32
    return %c0_i32, %c0_i32_0 : i32, i32
  }
  func.func @transform_4(%arg0: i32, %arg1: i32) -> (i32, i32, i32) {
    %c0_i32 = arith.constant 0 : i32
    %c0_i32_0 = arith.constant 0 : i32
    %c0_i32_1 = arith.constant 0 : i32
    return %arg0, %c0_i32, %c0_i32_0 : i32, i32, i32
  }
}

</mosaic_0001>

<bundles_post_ra>
// kernel: tpu_custom_call.1
= control target key start
LH: loop header
LB: loop body
LE: loop exit
PB: predicated region body
PF: predicated region fallthrough
CT: control target
= control target key end

     0   :  { %s4993_s15 = smov 0   ;;  %s4995_s16 = smov 0   ;;  %s6723_s0 = inlined_call_operand.vmem [shape: f32[2,256,64], index: 0, kind: input, shape index: {}]   ;;  %s6724_s1 = inlined_call_operand.vmem [shape: f32[6,256], index: 1, kind: input, shape index: {}]   ;;  %s6725_s2 = inlined_call_operand.vmem [shape: f32[256,1], index: 2, kind: input, shape index: {}]   ;;  %s6726_s3 = inlined_call_operand.vmem [shape: f32[256,1], index: 3, kind: input, shape index: {}]   ;;  %s6727_s4 = inlined_call_operand.vmem [shape: f32[2,256,6], index: 4, kind: output, shape index: {}]  }
   0x1   :  { %s4997_s17 = smov 0  }
   0x2 LB: > { %s26_s18 = sadd.s32 1, %s4960_s16  ;;  %p3753_p0 = scmp.ge.s32.totalorder %s4964_s17, 1  ;;  %s4964_s17 = sphi %s4997_s17, %s14_s17   ;;  %s4960_s16 = sphi %s4995_s16, %s7079_s16   ;;  %s4956_s15 = sphi %s4993_s15, %s7078_s15  }
   0x3   : > { %p28_p1 = scmp.ge.s32.totalorder %s26_s18, 2  ;;  %p179_p2 = scmp.lt.s32.totalorder %s4964_s17, 3 }
   0x5   : > { %s7081_s18 = smov (%p28_p1, %s26_s18), 0  ;;  %p180_p3 = pnand %p3753_p0, %p179_p2 }
   0x7   : > { %183 = sbr.rel (%p180_p3) target bundleno = 770 (0x302), region = 36 }
   0xe   : > { %v408_v0 = vld [vmem:[%s6725_s2 + $0xd0] sm:$0xff]  ;;  %v406_v1 = vld [vmem:[%s6725_s2 + $0xc0] sm:$0xff]  ;;  %p208_p4 = scmp.lt.s32.totalorder %s4956_s15, 1  ;;  %v4966_v2 = vmov 0   ;;  %v407_v4 = vld [vmem:[%s6725_s2 + $0xc8] sm:$0xff]  ;;  %vm362_vm1 = vcmask 521216  }
   0xf   : > { %4937 = vset.pattern.permute.xlu1 %v4966_v2  ;;  %4936 = vset.pattern.permute.xlu0 %v4966_v2  ;;  %v630_v3 = vld [vmem:[%s6726_s3 + $0xc0] sm:$0xff]  ;;  %v631_v5 = vld [vmem:[%s6726_s3 + $0xc8] sm:$0xff]  ;;  %v409_v6 = vld [vmem:[%s6725_s2 + $0xd8] sm:$0xff]  ;;  %vm1013_vm2 = vcmask 523264   ;;  %vm225_vm3 = vcmask 48128  }
  0x10   : > { %546 = vperm.xlu1 %4937, %v408_v0   ;;  %536 = vperm.xlu0 %4936, %v406_v1   ;;  %s7083_s15 = smov (!%p208_p4, %s4956_s15), 1  ;;  %v632_v20 = vld [vmem:[%s6726_s3 + $0xd0] sm:$0xff]  ;;  %v410_v21 = vld [vmem:[%s6725_s2 + $0xe0] sm:$0xff]  ;;  %v633_v28 = vld [vmem:[%s6726_s3 + $0xd8] sm:$0xff] }
  0x11   : > { %s3953_s27 = sshll.u32 %s7083_s15, 8  ;;  %v411_v29 = vld [vmem:[%s6725_s2 + $0xe8] sm:$0xff]  ;;  %v634_v37 = vld [vmem:[%s6726_s3 + $0xe0] sm:$0xff]  ;;  %v412_v38 = vld [vmem:[%s6725_s2 + $0xf0] sm:$0xff] }
  0x12   : > { %s5031_s30 = scalar_lea.vmem %s6723_s0, %s3953_s27  ;;  %v291_v36 = vld [vmem:[%s6724_s1 + $0x8] sm:$0x3f]  ;;  %v413_v46 = vld [vmem:[%s6725_s2 + $0xf8] sm:$0xff]  ;;  %v636_v53 = vld [vmem:[%s6726_s3 + $0xf0] sm:$0xff]  ;;  %s6581_s6 = scalar_lea.vmem %s6727_s4, %s3953_s27 }
  0x13   : > { %v5040_v7 = vld [vmem:[%s5031_s30 + $0x80] sm:$0xff]  ;;  %v5043_v8 = vld [vmem:[%s5031_s30 + $0x88] sm:$0xff]  ;;  %v5054_v12 = vld [vmem:[%s5031_s30 + $0x90] sm:$0xff]  ;;  %356 = vmatprep.mubr.f32.mxu0 %v291_v36 }
  0x14   : > { %760 = vperm.xlu1 %4937, %v630_v3   ;;  %541 = vperm.xlu0 %4936, %v407_v4   ;;  %6880 = vst [vmem:[#allocation3_spill] sm:$0xff] %v5040_v7  ;;  %6881 = vst [vmem:[#allocation4_spill] sm:$0xff] %v5043_v8  ;;  %v5046_v9 = vld [vmem:[%s5031_s30] sm:$0xff]  ;;  %v4614_v10 = vpack.c.bf16 %v5043_v8, %v5040_v7  ;;  %v5051_v11 = vld [vmem:[%s5031_s30 + $0x8] sm:$0xff] }
  0x15   : > { %6882 = vst [vmem:[#allocation5_spill] sm:$0xff] %v5054_v12  ;;  %v5057_v13 = vld [vmem:[%s5031_s30 + $0x98] sm:$0xff]  ;;  %v4616_v14 = vpack.c.bf16 %v5051_v11, %v5046_v9  ;;  %v5064_v16 = vld [vmem:[%s5031_s30 + $0x10] sm:$0xff]  ;;  %v5070_v18 = vld [vmem:[%s5031_s30 + $0xa0] sm:$0xff] }
  0x16   : > { %6883 = vst [vmem:[#allocation6_spill] sm:$0xff] %v5057_v13  ;;  %v4618_v15 = vpack.c.bf16 %v5057_v13, %v5054_v12  ;;  %v5067_v17 = vld [vmem:[%s5031_s30 + $0x18] sm:$0xff]  ;;  %4615 = vmatprep.subr.bf16.mxu0 %v4614_v10  ;;  %6884 = vst [vmem:[#allocation7_spill] sm:$0xff] %v5070_v18  ;;  %v5073_v19 = vld [vmem:[%s5031_s30 + $0xa8] sm:$0xff] }
  0x17   : > { %6885 = vst [vmem:[#allocation8_spill] sm:$0xff] %v5073_v19  ;;  %4617 = vmatpush3.bf16.msra.mxu0 %v4616_v14  ;;  %v4620_v22 = vpack.c.bf16 %v5067_v17, %v5064_v16  ;;  %v4622_v23 = vpack.c.bf16 %v5073_v19, %v5070_v18  ;;  %v5086_v24 = vld [vmem:[%s5031_s30 + $0x20] sm:$0xff]  ;;  %v5089_v25 = vld [vmem:[%s5031_s30 + $0x28] sm:$0xff]  ;;  %v5092_v26 = vld [vmem:[%s5031_s30 + $0xb0] sm:$0xff] }
  0x18   : > { %765 = vperm.xlu1 %4937, %v631_v5   ;;  %551 = vperm.xlu0 %4936, %v409_v6   ;;  %6886 = vst [vmem:[#allocation9_spill] sm:$0xff] %v5092_v26  ;;  %v5095_v27 = vld [vmem:[%s5031_s30 + $0xb8] sm:$0xff]  ;;  %v4624_v30 = vpack.c.bf16 %v5089_v25, %v5086_v24  ;;  %v5108_v32 = vld [vmem:[%s5031_s30 + $0x30] sm:$0xff]  ;;  %v5114_v34 = vld [vmem:[%s5031_s30 + $0xc0] sm:$0xff] }
  0x19   : > { %4619 = vmatprep.subr.bf16.mxu0 %v4618_v15  ;;  %6887 = vst [vmem:[#allocation10_spill] sm:$0xff] %v5095_v27  ;;  %v4626_v31 = vpack.c.bf16 %v5095_v27, %v5092_v26  ;;  %v5111_v33 = vld [vmem:[%s5031_s30 + $0x38] sm:$0xff]  ;;  %v5117_v35 = vld [vmem:[%s5031_s30 + $0xc8] sm:$0xff]  ;;  %v5133_v41 = vld [vmem:[%s5031_s30 + $0x40] sm:$0xff] }
  0x1a   : > { %v4628_v39 = vpack.c.bf16 %v5111_v33, %v5108_v32  ;;  %v4630_v40 = vpack.c.bf16 %v5117_v35, %v5114_v34  ;;  %v5136_v42 = vld [vmem:[%s5031_s30 + $0x48] sm:$0xff]  ;;  %v5139_v43 = vld [vmem:[%s5031_s30 + $0xd0] sm:$0xff]  ;;  %v5142_v44 = vld [vmem:[%s5031_s30 + $0xd8] sm:$0xff] }
  0x1b   : > { %4621 = vmatpush3.bf16.msra.mxu0 %v4620_v22  ;;  %6888 = vst [vmem:[#allocation11_spill] sm:$0xff] %v5136_v42  ;;  %v635_v45 = vld [vmem:[%s6726_s3 + $0xe8] sm:$0xff]  ;;  %v4632_v47 = vpack.c.bf16 %v5136_v42, %v5133_v41  ;;  %v4634_v48 = vpack.c.bf16 %v5142_v44, %v5139_v43  ;;  %v5155_v49 = vld [vmem:[%s5031_s30 + $0x50] sm:$0xff]  ;;  %v5158_v50 = vld [vmem:[%s5031_s30 + $0x58] sm:$0xff] }
  0x1c   : > { %770 = vperm.xlu1 %4937, %v632_v20   ;;  %556 = vperm.xlu0 %4936, %v410_v21   ;;  %6889 = vst [vmem:[#allocation12_spill] sm:$0xff] %v5155_v49  ;;  %6890 = vst [vmem:[#allocation13_spill] sm:$0xff] %v5158_v50  ;;  %v5161_v51 = vld [vmem:[%s5031_s30 + $0xe0] sm:$0xff]  ;;  %v5164_v52 = vld [vmem:[%s5031_s30 + $0xe8] sm:$0xff]  ;;  %v4636_v55 = vpack.c.bf16 %v5158_v50, %v5155_v49 }
  0x1d   : > { %4623 = vmatprep.subr.bf16.mxu0 %v4622_v23  ;;  %v382_v54 = vld [vmem:[%s6725_s2] sm:$0xff]  ;;  %v4638_v56 = vpack.c.bf16 %v5164_v52, %v5161_v51  ;;  %v5180_v58 = vld [vmem:[%s5031_s30 + $0x68] sm:$0xff]  ;;  %v5183_v59 = vld [vmem:[%s5031_s30 + $0xf0] sm:$0xff] }
  0x1e   : > { %v5177_v57 = vld [vmem:[%s5031_s30 + $0x60] sm:$0xff]  ;;  %6892 = vst [vmem:[#allocation15_spill] sm:$0xff] %v5180_v58  ;;  %v5186_v60 = vld [vmem:[%s5031_s30 + $0xf8] sm:$0xff]  ;;  %v383_v62 = vld [vmem:[%s6725_s2 + $0x8] sm:$0xff] }
  0x1f   : > { %4625 = vmatpush3.bf16.msra.mxu0 %v4624_v30  ;;  %6891 = vst [vmem:[#allocation14_spill] sm:$0xff] %v5177_v57  ;;  %v637_v61 = vld [vmem:[%s6726_s3 + $0xf8] sm:$0xff]  ;;  %v4640_v63 = vpack.c.bf16 %v5180_v58, %v5177_v57  ;;  %v4642_v0 = vpack.c.bf16 %v5186_v60, %v5183_v59  ;;  %v5199_v1 = vld [vmem:[%s5031_s30 + $0x70] sm:$0xff]  ;;  %v606_v3 = vld [vmem:[%s6726_s3] sm:$0xff] }
  0x20   : > { %775 = vperm.xlu1 %4937, %v633_v28   ;;  %561 = vperm.xlu0 %4936, %v411_v29   ;;  %6893 = vst [vmem:[#allocation16_spill] sm:$0xff] %v5199_v1  ;;  %v5202_v2 = vld [vmem:[%s5031_s30 + $0x78] sm:$0xff]  ;;  %v384_v4 = vld [vmem:[%s6725_s2 + $0x10] sm:$0xff]  ;;  %v290_v6 = vld [vmem:[%s6724_s1] sm:$0x3f] }
  0x21   : > { %4627 = vmatprep.subr.bf16.mxu0 %v4626_v31  ;;  %6894 = vst [vmem:[#allocation17_spill] sm:$0xff] %v5202_v2  ;;  %v4644_v5 = vpack.c.bf16 %v5202_v2, %v5199_v1  ;;  %v607_v10 = vld [vmem:[%s6726_s3 + $0x8] sm:$0xff]  ;;  %v385_v14 = vld [vmem:[%s6725_s2 + $0x18] sm:$0xff]  ;;  %v608_v15 = vld [vmem:[%s6726_s3 + $0x10] sm:$0xff] }
  0x22   : > { %v386_v20 = vld [vmem:[%s6725_s2 + $0x20] sm:$0xff]  ;;  %v609_v21 = vld [vmem:[%s6726_s3 + $0x18] sm:$0xff]  ;;  %v387_v22 = vld [vmem:[%s6725_s2 + $0x28] sm:$0xff] }
  0x23   : > { %4629 = vmatpush3.bf16.msra.mxu0 %v4628_v39  ;;  %v610_v23 = vld [vmem:[%s6726_s3 + $0x20] sm:$0xff]  ;;  %v388_v28 = vld [vmem:[%s6725_s2 + $0x30] sm:$0xff]  ;;  %v611_v29 = vld [vmem:[%s6726_s3 + $0x28] sm:$0xff] }
  0x24   : > { %780 = vperm.xlu1 %4937, %v634_v37   ;;  %566 = vperm.xlu0 %4936, %v412_v38   ;;  %v389_v30 = vld [vmem:[%s6725_s2 + $0x38] sm:$0xff]  ;;  %v612_v31 = vld [vmem:[%s6726_s3 + $0x30] sm:$0xff]  ;;  %v390_v36 = vld [vmem:[%s6725_s2 + $0x40] sm:$0xff] }
  0x25   : > { %4631 = vmatprep.subr.bf16.mxu0 %v4630_v40  ;;  %v613_v37 = vld [vmem:[%s6726_s3 + $0x38] sm:$0xff]  ;;  %v391_v38 = vld [vmem:[%s6725_s2 + $0x48] sm:$0xff]  ;;  %v614_v39 = vld [vmem:[%s6726_s3 + $0x40] sm:$0xff] }
  0x26   : > { %v392_v40 = vld [vmem:[%s6725_s2 + $0x50] sm:$0xff] }
  0x27   : > { %4633 = vmatpush3.bf16.msra.mxu0 %v4632_v47  ;;  %v616_v47 = vld [vmem:[%s6726_s3 + $0x50] sm:$0xff] }
  0x28   : > { %785 = vperm.xlu1 %4937, %v635_v45   ;;  %571 = vperm.xlu0 %4936, %v413_v46   ;;  %v615_v45 = vld [vmem:[%s6726_s3 + $0x48] sm:$0xff]  ;;  %v393_v46 = vld [vmem:[%s6725_s2 + $0x58] sm:$0xff] }
  0x29   : > { %4635 = vmatprep.subr.bf16.mxu0 %v4634_v48  ;;  %v394_v48 = vld [vmem:[%s6725_s2 + $0x60] sm:$0xff] }
  0x2b   : > { %4637 = vmatpush3.bf16.msra.mxu0 %v4636_v55  ;;  %v618_v55 = vld [vmem:[%s6726_s3 + $0x60] sm:$0xff] }
  0x2c   : > { %790 = vperm.xlu1 %4937, %v636_v53   ;;  %416 = vperm.xlu0 %4936, %v382_v54   ;;  %v617_v53 = vld [vmem:[%s6726_s3 + $0x58] sm:$0xff]  ;;  %v395_v54 = vld [vmem:[%s6725_s2 + $0x68] sm:$0xff] }
  0x2d   : > { %4639 = vmatprep.subr.bf16.mxu0 %v4638_v56  ;;  %v396_v56 = vld [vmem:[%s6725_s2 + $0x70] sm:$0xff] }
  0x2f   : > { %4641 = vmatpush3.bf16.msra.mxu0 %v4640_v63  ;;  %v620_v63 = vld [vmem:[%s6726_s3 + $0x70] sm:$0xff] }
  0x30   : > { %795 = vperm.xlu1 %4937, %v637_v61   ;;  %421 = vperm.xlu0 %4936, %v383_v62   ;;  %v619_v61 = vld [vmem:[%s6726_s3 + $0x68] sm:$0xff]  ;;  %v397_v62 = vld [vmem:[%s6725_s2 + $0x78] sm:$0xff] }
  0x31   : > { %4643 = vmatprep.subr.bf16.mxu0 %v4642_v0  ;;  %v398_v0 = vld [vmem:[%s6725_s2 + $0x80] sm:$0xff] }
  0x33   : > { %4645 = vmatpush3.bf16.msra.mxu0 %v4644_v5  ;;  %v622_v5 = vld [vmem:[%s6726_s3 + $0x80] sm:$0xff] }
  0x34   : > { %640 = vperm.xlu1 %4937, %v606_v3   ;;  %426 = vperm.xlu0 %4936, %v384_v4   ;;  %v621_v3 = vld [vmem:[%s6726_s3 + $0x78] sm:$0xff]  ;;  %v399_v4 = vld [vmem:[%s6725_s2 + $0x88] sm:$0xff] }
  0x36   : > { %357 = vmatmul.mubr.f32.vlgmr.msra.gmra.mrb[0].mxu0 %v290_v6  ;;  %v400_v6 = vld [vmem:[%s6725_s2 + $0x90] sm:$0xff] }
  0x38   : > { %645 = vperm.xlu1 %4937, %v607_v10   ;;  %431 = vperm.xlu0 %4936, %v385_v14   ;;  %v623_v10 = vld [vmem:[%s6726_s3 + $0x88] sm:$0xff]  ;;  %v401_v14 = vld [vmem:[%s6725_s2 + $0x98] sm:$0xff] }
  0x3c   : > { %650 = vperm.xlu1 %4937, %v608_v15   ;;  %436 = vperm.xlu0 %4936, %v386_v20   ;;  %v624_v15 = vld [vmem:[%s6726_s3 + $0x90] sm:$0xff]  ;;  %v402_v20 = vld [vmem:[%s6725_s2 + $0xa0] sm:$0xff] }
  0x40   : > { %655 = vperm.xlu1 %4937, %v609_v21   ;;  %441 = vperm.xlu0 %4936, %v387_v22   ;;  %v625_v21 = vld [vmem:[%s6726_s3 + $0x98] sm:$0xff]  ;;  %v403_v22 = vld [vmem:[%s6725_s2 + $0xa8] sm:$0xff] }
  0x44   : > { %660 = vperm.xlu1 %4937, %v610_v23   ;;  %446 = vperm.xlu0 %4936, %v388_v28   ;;  %v626_v23 = vld [vmem:[%s6726_s3 + $0xa0] sm:$0xff]  ;;  %v404_v28 = vld [vmem:[%s6725_s2 + $0xb0] sm:$0xff] }
  0x48   : > { %665 = vperm.xlu1 %4937, %v611_v29   ;;  %451 = vperm.xlu0 %4936, %v389_v30   ;;  %v627_v29 = vld [vmem:[%s6726_s3 + $0xa8] sm:$0xff]  ;;  %v405_v30 = vld [vmem:[%s6725_s2 + $0xb8] sm:$0xff] }
  0x4c   : > { %670 = vperm.xlu1 %4937, %v612_v31   ;;  %456 = vperm.xlu0 %4936, %v390_v36   ;;  %v629_v31 = vld [vmem:[%s6726_s3 + $0xb8] sm:$0xff]  ;;  %v628_v36 = vld [vmem:[%s6726_s3 + $0xb0] sm:$0xff] }
  0x50   : > { %675 = vperm.xlu1 %4937, %v613_v37   ;;  %461 = vperm.xlu0 %4936, %v391_v38   ;;  %v798_v37 = vlaneseq }
  0x52   : > { %v5347_v38 = vshrl.u32 %v798_v37, 7 }
  0x54   : > { %680 = vperm.xlu1 %4937, %v614_v39   ;;  %466 = vperm.xlu0 %4936, %v392_v40   ;;  %v801_v39 = vand.u32 127, %v798_v37  ;;  %v6732_v40 = vsub.s32 1, %v5347_v38  ;;  %v807_v37 = vsub.s32 0, %v5347_v38 }
  0x56   : > { %vm802_vm0 = vcmp.eq.s32.totalorder %v5347_v38, %v801_v39 }
  0x58   : > { %685 = vperm.xlu1 %4937, %v615_v45   ;;  %471 = vperm.xlu0 %4936, %v393_v46   ;;  %v6731_v45 = vsub.s32 2, %v5347_v38 }
  0x5c   : > { %690 = vperm.xlu1 %4937, %v616_v47   ;;  %476 = vperm.xlu0 %4936, %v394_v48   ;;  %v6728_v47 = vmov 0.0  }
  0x5d   : > { %v5355_v48 = vsel %vm802_vm0, 1.0, %v6728_v47 }
  0x5e   : > { %6895 = vst [vmem:[#allocation18_spill] sm:$0xff] %v5355_v48 }
  0x60   : > { %695 = vperm.xlu1 %4937, %v617_v53   ;;  %481 = vperm.xlu0 %4936, %v395_v54   ;;  %v1759_v53 = vrot.slane %v5355_v48, %v6731_v45  ;;  %v1012_v54 = vrot.slane %v5355_v48, %v6732_v40 }
  0x64   : > { %700 = vperm.xlu1 %4937, %v618_v55   ;;  %486 = vperm.xlu0 %4936, %v396_v56   ;;  %v5365_v56 = vpack.c.bf16 %v1759_v53, %v1759_v53  ;;  %v908_v53 = vrot.slane %v5355_v48, %v807_v37 }
  0x66   : > { %6896 = vst [vmem:[#allocation19_spill] sm:$0xff] %v5365_v56  ;;  %4742 = vmatprep.subr.bf16.mxu1 %v5365_v56 }
  0x67   : > { %4746 = vmatpush3.bf16.msra.mxu1 %v5365_v56 }
  0x68   : > { %705 = vperm.xlu1 %4937, %v619_v61   ;;  %491 = vperm.xlu0 %4936, %v397_v62   ;;  %v4646_v61 = vpack.c.bf16 %v1012_v54, %v1012_v54 }
  0x69   : > { %4743 = vmatprep.subr.bf16.mxu1 %v5365_v56 }
  0x6a   : > { %4647 = vmatprep.subr.bf16.mxu0 %v4646_v61 }
  0x6b   : > { %4649 = vmatpush3.bf16.msra.mxu0 %v4646_v61  ;;  %4747 = vmatpush3.bf16.msra.mxu1 %v5365_v56 }
  0x6c   : > { %710 = vperm.xlu1 %4937, %v620_v63   ;;  %496 = vperm.xlu0 %4936, %v398_v0  }
  0x6d   : > { %4651 = vmatprep.subr.bf16.mxu0 %v4646_v61  ;;  %4744 = vmatprep.subr.bf16.mxu1 %v5365_v56 }
  0x6f   : > { %4653 = vmatpush3.bf16.msra.mxu0 %v4646_v61  ;;  %4748 = vmatpush3.bf16.msra.mxu1 %v5365_v56 }
  0x70   : > { %715 = vperm.xlu1 %4937, %v621_v3   ;;  %501 = vperm.xlu0 %4936, %v399_v4   ;;  %v6730_v4 = vsub.s32 3, %v5347_v38 }
  0x71   : > { %4655 = vmatprep.subr.bf16.mxu0 %v4646_v61  ;;  %4745 = vmatprep.subr.bf16.mxu1 %v5365_v56 }
  0x73   : > { %4657 = vmatpush3.bf16.msra.mxu0 %v4646_v61  ;;  %4749 = vmatpush3.bf16.msra.mxu1 %v5365_v56 }
  0x74   : > { %720 = vperm.xlu1 %4937, %v622_v5   ;;  %506 = vperm.xlu0 %4936, %v400_v6   ;;  %v2216_v6 = vrot.slane %v5355_v48, %v6730_v4 }
  0x75   : > { %4659 = vmatprep.subr.bf16.mxu0 %v4646_v61 }
  0x77   : > { %4661 = vmatpush3.bf16.msra.mxu0 %v4646_v61  ;;  %v5418_v61 = vpack.c.bf16 %v908_v53, %v908_v53 }
  0x78   : > { %725 = vperm.xlu1 %4937, %v623_v10   ;;  %511 = vperm.xlu0 %4936, %v401_v14   ;;  %v5389_v10 = vpack.c.bf16 %v2216_v6, %v2216_v6 }
  0x79   : > { %4663 = vmatprep.subr.bf16.mxu0 %v5418_v61 }
  0x7a   : > { %6898 = vst [vmem:[#allocation21_spill] sm:$0xff] %v5389_v10  ;;  %4695 = vmatprep.subr.bf16.mxu1 %v5389_v10 }
  0x7c   : > { %730 = vperm.xlu1 %4937, %v624_v15   ;;  %516 = vperm.xlu0 %4936, %v402_v20  }
  0x80   : > { %735 = vperm.xlu1 %4937, %v625_v21   ;;  %521 = vperm.xlu0 %4936, %v403_v22  }
  0x84   : > { %740 = vperm.xlu1 %4937, %v626_v23   ;;  %526 = vperm.xlu0 %4936, %v404_v28  }
  0x88   : > { %745 = vperm.xlu1 %4937, %v627_v29   ;;  %531 = vperm.xlu0 %4936, %v405_v30  }
  0x8c   : > { %755 = vperm.xlu1 %4937, %v629_v31   ;;  %750 = vperm.xlu0 %4936, %v628_v36  }
  0x8f   : > { %v5351_v46 = vpop.permute.xlu0 %536  ;;  %v5363_v55 = vpop.permute.xlu1 %546 }
  0x93   : > { %v5367_v62 = vpop.permute.xlu0 %541  ;;  %v5372_v63 = vpop.permute.xlu1 %760 }
  0x94   : > { %6897 = vst [vmem:[#allocation20_spill] sm:$0xff] %v5372_v63 }
  0x97   : > { %v5375_v0 = vpop.permute.xlu0 %551  ;;  %v5378_v3 = vpop.permute.xlu1 %765 }
  0x9b   : > { %v5383_v5 = vpop.permute.xlu0 %556  ;;  %v5391_v14 = vpop.permute.xlu1 %770 }
  0x9c   : > { %6899 = vst [vmem:[#allocation22_spill] sm:$0xff] %v5391_v14 }
  0x9f   : > { %v5394_v15 = vpop.permute.xlu0 %561  ;;  %v5396_v20 = vpop.permute.xlu1 %775 }
  0xa0   : > { %6900 = vst [vmem:[#allocation23_spill] sm:$0xff] %v5396_v20 }
  0xa3   : > { %v5398_v21 = vpop.permute.xlu0 %566  ;;  %v5400_v22 = vpop.permute.xlu1 %780 }
  0xa4   : > { %6901 = vst [vmem:[#allocation24_spill] sm:$0xff] %v5400_v22 }
  0xa7   : > { %v5402_v23 = vpop.permute.xlu0 %571  ;;  %v5404_v28 = vpop.permute.xlu1 %785 }
  0xa8   : > { %6902 = vst [vmem:[#allocation25_spill] sm:$0xff] %v5404_v28 }
  0xab   : > { %v5406_v29 = vpop.permute.xlu0 %416  ;;  %v5408_v30 = vpop.permute.xlu1 %790 }
  0xac   : > { %6903 = vst [vmem:[#allocation26_spill] sm:$0xff] %v5408_v30 }
  0xaf   : > { %v422_v31 = vpop.permute.xlu0 %421  ;;  %v5410_v36 = vpop.permute.xlu1 %795 }
  0xb0   : > { %6904 = vst [vmem:[#allocation27_spill] sm:$0xff] %v5410_v36 }
  0xb3   : > { %v5413_v39 = vpop.permute.xlu0 %426  ;;  %v5416_v54 = vpop.permute.xlu1 %640 }
  0xb4   : > { %6905 = vst [vmem:[#allocation28_spill] sm:$0xff] %v5416_v54 }
  0xb7   : > { %v5421_v6 = vpop.permute.xlu0 %431  ;;  %v5423_v47 = vpop.permute.xlu1 %645 }
  0xbb   : > { %v5425_v4 = vpop.permute.xlu0 %436  ;;  %v5427_v45 = vpop.permute.xlu1 %650 }
  0xbf   : > { %v5429_v40 = vpop.permute.xlu0 %441  ;;  %v5431_v27 = vpop.permute.xlu1 %655 }
  0xc0   : > { %6906 = vst [vmem:[#allocation29_spill] sm:$0xff] %v5431_v27 }
  0xc3   : > { %v5433_v26 = vpop.permute.xlu0 %446  ;;  %v5435_v19 = vpop.permute.xlu1 %660 }
  0xc4   : > { %6907 = vst [vmem:[#allocation30_spill] sm:$0xff] %v5435_v19 }
  0xc7   : > { %v5437_v13 = vpop.permute.xlu0 %451  ;;  %v5440_v56 = vpop.permute.xlu1 %665 }
  0xc8   : > { %6908 = vst [vmem:[#allocation31_spill] sm:$0xff] %v5440_v56 }
  0xcb   : > { %v5442_v1 = vpop.permute.xlu0 %456  ;;  %v5444_v57 = vpop.permute.xlu1 %670 }
  0xcc   : > { %6909 = vst [vmem:[#allocation32_spill] sm:$0xff] %v5444_v57 }
  0xcf   : > { %v5446_v50 = vpop.permute.xlu0 %461  ;;  %v5448_v30 = vpop.permute.xlu1 %675 }
  0xd0   : > { %6910 = vst [vmem:[#allocation33_spill] sm:$0xff] %v5446_v50  ;;  %6911 = vst [vmem:[#allocation34_spill] sm:$0xff] %v5448_v30 }
  0xd3   : > { %v5452_v10 = vpop.permute.xlu1 %680 }
  0xd4   : > { %6913 = vst [vmem:[#allocation36_spill] sm:$0xff] %v5452_v10 }
 0x109   : > { %v3987_v53 = vpop.f32.mrb[0].mxu0 }
 0x10a   : > { %v3988_v18 = vpop.f32.mrb[1].mxu0 }
 0x10b   : > { %v3989_v12 = vadd.f32 %v3988_v18, %v3987_v53  ;;  %v5450_v53 = vpop.permute.xlu0 %466 }
 0x10c   : > { %6912 = vst [vmem:[#allocation35_spill] sm:$0xff] %v5450_v53 }
 0x10d   : > { %v363_v8 = vsel %vm362_vm1, %v3989_v12, -inf }
 0x10e   : > { %v364_v7 = vrot.slane %v363_v8, 4 }
 0x110   : > { %v365_v2 = vmax.f32 %v363_v8, %v364_v7  ;;  %v5454_v7 = vpop.permute.xlu0 %471  ;;  %v5456_v8 = vpop.permute.xlu1 %685 }
 0x111   : > { %6914 = vst [vmem:[#allocation37_spill] sm:$0xff] %v5454_v7  ;;  %6915 = vst [vmem:[#allocation38_spill] sm:$0xff] %v5456_v8 }
 0x112   : > { %v366_v58 = vrot.slane %v365_v2, 2 }
 0x114   : > { %v367_v36 = vmax.f32 %v365_v2, %v366_v58  ;;  %v5458_v57 = vpop.permute.xlu0 %476 }
 0x115   : > { %6916 = vst [vmem:[#allocation39_spill] sm:$0xff] %v5458_v57 }
 0x116   : > { %v368_v48 = vrot.slane %v367_v36, 1 }
 0x118   : > { %v369_v49 = vmax.f32 %v367_v36, %v368_v48  ;;  %v5461_v48 = vpop.permute.xlu1 %690 }
 0x119   : > { %6917 = vst [vmem:[#allocation40_spill] sm:$0xff] %v5461_v48 }
 0x11a   : > { %v370_v28 = vsub.f32 %v3989_v12, %v369_v49  ;;  %v5463_v49 = vpop.permute.xlu0 %481 }
 0x11c   : > { %v371_v18 = vmul.f32 1.442695, %v370_v28 }
 0x11e   : > { %4938 = vpow2.f32 %v371_v18  ;;  %v5465_v18 = vpop.permute.xlu1 %695  ;;  %v5467_v7 = vpop.permute.xlu0 %486 }
 0x122   : > { %v5469_v8 = vpop.permute.xlu1 %700  ;;  %v5471_v57 = vpop.permute.xlu0 %491 }
 0x123   : > { %6918 = vst [vmem:[#allocation41_spill] sm:$0xff] %v5471_v57  ;;  %v6923_v57 = vsub.s32 2, %v5347_v38 }
 0x126   : > { %v5473_v53 = vpop.permute.xlu1 %705  ;;  %v5477_v48 = vpop.permute.xlu0 %496 }
 0x127   : > { %6919 = vst [vmem:[#allocation42_spill] sm:$0xff] %v5473_v53 }
 0x128   : > { %v4939_v42 = vpop.eup %4938 }
 0x129   : > { %v373_v58 = vsel %vm362_vm1, %v4939_v42, 0.0 }
 0x12a   : > { %v374_v2 = vrot.slane %v373_v58, 4 }
 0x12c   : > { %v375_v36 = vadd.f32 %v374_v2, %v373_v58  ;;  %v6763_v2 = vsub.s32 5, %v5347_v38  ;;  %v5494_v58 = vmul.f32 %v5351_v46, %v5114_v34  ;;  %v5516_v34 = vmul.f32 %v5367_v62, %v5117_v35 }
 0x12d   : > { %v5542_v62 = vmul.f32 %v5383_v5, %v5161_v51  ;;  %v5567_v5 = vmul.f32 %v5421_v6, %v5067_v17 }
 0x12e   : > { %v376_v12 = vrot.slane %v375_v36, 2 }
 0x12f   : > { %6934 = vst [vmem:[#allocation54_spill] sm:$0xff] %v5542_v62 }
 0x130   : > { %v377_v28 = vadd.f32 %v376_v12, %v375_v36  ;;  %v5480_v12 = vmul.f32 %v422_v31, %v5051_v11  ;;  %v5500_v11 = vpop.permute.xlu1 %710 }
 0x132   : > { %v378_v10 = vrot.slane %v377_v28, 1  ;;  %6920 = vst [vmem:[#allocation43_spill] sm:$0xff] %v5480_v12 }
 0x134   : > { %v379_v30 = vadd.f32 %v378_v10, %v377_v28 }
 0x136   : > { %4940 = vrcp.f32 %v379_v30  ;;  %v6922_v30 = vsub.s32 1, %v5347_v38 }
 0x140   : > { %v4941_v50 = vpop.eup %4940 }
 0x141   : > { %v381_v36 = vmul.f32 %v4941_v50, %v4939_v42  ;;  %v5498_v42 = vmul.f32 %v5406_v29, %v5046_v9  ;;  %v6926_v50 = vsub.s32 4, %v5347_v38 }
 0x143   : > { %v5482_v10 = vrot.slane %v381_v36, %v807_v37  ;;  %v5486_v28 = vrot.slane %v381_v36, %v6922_v30  ;;  %v5490_v53 = vrot.slane %v381_v36, %v6923_v57  ;;  %6925 = vst [vmem:[#allocation46_spill] sm:$0xff] %v5498_v42  ;;  %v5504_v31 = vrot.slane %v381_v36, %v6926_v50 }
 0x144   : > { %v5508_v37 = vrot.slane %v381_v36, %v6763_v2  ;;  %v5512_v57 = vmul.f32 %v5363_v55, %v5139_v43  ;;  %v5538_v55 = vmul.f32 %v5375_v0, %v5142_v44  ;;  %v5546_v50 = vmul.f32 %v5394_v15, %v5164_v52  ;;  %v5548_v2 = vpop.permute.xlu0 %501 }
 0x145   : > { %6921 = vst [vmem:[#allocation44_spill] sm:$0xff] %v5482_v10  ;;  %6924 = vst [vmem:[#allocation45_spill] sm:$0xff] %v5490_v53  ;;  %v5520_v9 = vmul.f32 %v5482_v10, %v5480_v12  ;;  %v914_v46 = vmul.f32 %v5486_v28, %v5480_v12  ;;  %v5526_v29 = vmul.f32 %v5504_v31, %v5480_v12  ;;  %v6953_v10 = vld [vmem:[#allocation26_spill] sm:$0xff] }
 0x146   : > { %6927 = vst [vmem:[#allocation47_spill] sm:$0xff] %v5504_v31  ;;  %6928 = vst [vmem:[#allocation48_spill] sm:$0xff] %v5508_v37  ;;  %v5530_v30 = vmul.f32 %v5508_v37, %v5480_v12  ;;  %v913_v43 = vmul.f32 %v5486_v28, %v5498_v42  ;;  %v1684_v35 = vmul.f32 %v5490_v53, %v5494_v58  ;;  %v6952_v31 = vld [vmem:[#allocation32_spill] sm:$0xff] }
 0x147   : > { %6929 = vst [vmem:[#allocation49_spill] sm:$0xff] %v5512_v57  ;;  %6930 = vst [vmem:[#allocation50_spill] sm:$0xff] %v5520_v9  ;;  %v5553_v37 = vmul.f32 %v5398_v21, %v5183_v59  ;;  %v5557_v44 = vmul.f32 %v5402_v23, %v5186_v60  ;;  %v5563_v52 = vmul.f32 %v5413_v39, %v5064_v16  ;;  %v5577_v21 = vpop.permute.xlu1 %715 }
 0x148   : > { %6931 = vst [vmem:[#allocation51_spill] sm:$0xff] %v5526_v29  ;;  %6932 = vst [vmem:[#allocation52_spill] sm:$0xff] %v5530_v30  ;;  %v946_v30 = vadd.f32 %v914_v46, %v5423_v47  ;;  %v945_v0 = vadd.f32 %v913_v43, %v5416_v54  ;;  %v1716_v51 = vadd.f32 %v1684_v35, %v5372_v63  ;;  %v5595_v6 = vpop.permute.xlu0 %506 }
 0x149   : > { %6933 = vst [vmem:[#allocation53_spill] sm:$0xff] %v5538_v55  ;;  %6935 = vst [vmem:[#allocation55_spill] sm:$0xff] %v5546_v50  ;;  %v5571_v59 = vmul.f32 %v5425_v4, %v5086_v24  ;;  %v5575_v60 = vmul.f32 %v5429_v40, %v5089_v25  ;;  %v1685_v16 = vmul.f32 %v5490_v53, %v5516_v34 }
 0x14a   : > { %6936 = vst [vmem:[#allocation56_spill] sm:$0xff] %v5553_v37  ;;  %6937 = vst [vmem:[#allocation57_spill] sm:$0xff] %v5557_v44  ;;  %v978_v15 = vmax.f32 %v946_v30, 0.0  ;;  %v977_v23 = vmax.f32 %v945_v0, 0.0  ;;  %v1748_v46 = vmax.f32 %v1716_v51, 0.0  ;;  %v915_v17 = vmul.f32 %v5486_v28, %v5563_v52 }
 0x14b   : > { %6938 = vst [vmem:[#allocation58_spill] sm:$0xff] %v5563_v52  ;;  %6939 = vst [vmem:[#allocation59_spill] sm:$0xff] %v5571_v59  ;;  %v1686_v39 = vmul.f32 %v5490_v53, %v5512_v57  ;;  %v916_v24 = vmul.f32 %v5486_v28, %v5567_v5  ;;  %v1687_v25 = vmul.f32 %v5490_v53, %v5538_v55 }
 0x14c   : > { %6940 = vst [vmem:[#allocation60_spill] sm:$0xff] %v5575_v60  ;;  %6941 = vst [vmem:[#allocation61_spill] sm:$0xff] %v5577_v21  ;;  %4246 = vmatprep.mubr.msk.f32.mxu0 %vm1013_vm2, %v977_v23  ;;  %4410 = vmatprep.mubr.msk.f32.mxu1 %vm1013_vm2, %v1748_v46  ;;  %v917_v40 = vmul.f32 %v5486_v28, %v5571_v59  ;;  %v1688_v4 = vmul.f32 %v5490_v53, %v5542_v62 }
 0x14d   : > { %4247 = vmatmul.mubr.msk.f32.vlgmr.msra.gmra.mrb[2].mxu0 %vm1013_vm2, %v978_v15  ;;  %v1717_v30 = vadd.f32 %v1685_v16, %v5378_v3  ;;  %v947_v43 = vadd.f32 %v915_v17, %v5427_v45  ;;  %v1718_v35 = vadd.f32 %v1686_v39, %v5391_v14  ;;  %v948_v0 = vadd.f32 %v916_v24, %v5431_v27 }
 0x14e   : > { %v5604_v51 = vmul.f32 %v5433_v26, %v5108_v32  ;;  %v5608_v23 = vmul.f32 %v5437_v13, %v5111_v33  ;;  %v949_v46 = vadd.f32 %v917_v40, %v5435_v19  ;;  %v918_v15 = vmul.f32 %v5486_v28, %v5575_v60  ;;  %4665 = vmatpush3.bf16.msra.mxu0 %v5418_v61  ;;  %v5620_v32 = vpop.permute.xlu1 %720 }
 0x14f   : > { %v5616_v16 = vmul.f32 %v5442_v1, %v5133_v41  ;;  %v1749_v17 = vmax.f32 %v1717_v30, 0.0  ;;  %v979_v39 = vmax.f32 %v947_v43, 0.0  ;;  %v1719_v26 = vadd.f32 %v1687_v25, %v5396_v20  ;;  %4667 = vmatprep.subr.bf16.mxu0 %v5418_v61  ;;  %6945 = vst [vmem:[#allocation65_spill] sm:$0xff] %v5620_v32  ;;  %v6947_v30 = vld [vmem:[#allocation11_spill] sm:$0xff]  ;;  %v6948_v43 = vld [vmem:[#allocation33_spill] sm:$0xff] }
 0x150   : > { %6942 = vst [vmem:[#allocation62_spill] sm:$0xff] %v5604_v51  ;;  %6943 = vst [vmem:[#allocation63_spill] sm:$0xff] %v5608_v23  ;;  %v6946_v13 = vsub.s32 3, %v5347_v38  ;;  %v1750_v24 = vmax.f32 %v1718_v35, 0.0  ;;  %v1720_v40 = vadd.f32 %v1688_v4, %v5400_v22  ;;  %v950_v29 = vadd.f32 %v918_v15, %v5440_v56  ;;  %v6950_v4 = vld [vmem:[#allocation21_spill] sm:$0xff]  ;;  %v6955_v20 = vld [vmem:[#allocation35_spill] sm:$0xff] }
 0x151   : > { %6944 = vst [vmem:[#allocation64_spill] sm:$0xff] %v5616_v16  ;;  %4411 = vmatmul.mubr.msk.f32.vlgmr.msra.gmra.mrb[0].mxu1 %vm1013_vm2, %v1749_v17  ;;  %4249 = vmatprep.mubr.msk.f32.mxu0 %vm1013_vm2, %v979_v39  ;;  %v980_v41 = vmax.f32 %v948_v0, 0.0  ;;  %v1689_v1 = vmul.f32 %v5490_v53, %v5546_v50  ;;  %v919_v25 = vmul.f32 %v5486_v28, %v5604_v51  ;;  %v981_v15 = vmax.f32 %v949_v46, 0.0  ;;  %v5646_v39 = vpop.permute.xlu0 %511  ;;  %v6954_v50 = vld [vmem:[#allocation12_spill] sm:$0xff] }
 0x152   : > { %v5624_v33 = vrot.slane %v381_v36, %v6946_v13  ;;  %v1690_v36 = vmul.f32 %v5490_v53, %v5553_v37  ;;  %v5638_v35 = vmul.f32 %v6948_v43, %v6947_v30  ;;  %4697 = vmatpush3.bf16.msra.mxu1 %v6950_v4  ;;  %4413 = vmatprep.mubr.msk.f32.mxu1 %vm1013_vm2, %v1750_v24  ;;  %v1751_v13 = vmax.f32 %v1719_v26, 0.0  ;;  %v6951_v30 = vld [vmem:[#allocation25_spill] sm:$0xff] }
 0x153   : > { %v920_v0 = vmul.f32 %v5486_v28, %v5608_v23  ;;  %v921_v17 = vmul.f32 %v5486_v28, %v5616_v16  ;;  %4699 = vmatprep.subr.bf16.mxu1 %v6950_v4  ;;  %4250 = vmatmul.mubr.msk.f32.gmra.mrb[4].mxu0 %vm1013_vm2, %v980_v41  ;;  %v1721_v43 = vadd.f32 %v1689_v1, %v6951_v30  ;;  %v1752_v24 = vmax.f32 %v1720_v40, 0.0  ;;  %v6957_v41 = vld [vmem:[#allocation34_spill] sm:$0xff]  ;;  %v6958_v40 = vld [vmem:[#allocation13_spill] sm:$0xff]  ;;  %v6967_v30 = vld [vmem:[#allocation39_spill] sm:$0xff] }
 0x154   : > { %6949 = vst [vmem:[#allocation11_spill] sm:$0xff] %v5638_v35  ;;  %v951_v9 = vadd.f32 %v919_v25, %v6952_v31  ;;  %v1691_v46 = vmul.f32 %v5490_v53, %v5557_v44  ;;  %4252 = vmatprep.mubr.msk.f32.mxu0 %vm1013_vm2, %v981_v15  ;;  %v1722_v37 = vadd.f32 %v1690_v36, %v6953_v10  ;;  %v982_v26 = vmax.f32 %v950_v29, 0.0  ;;  %v6959_v15 = vld [vmem:[#allocation37_spill] sm:$0xff]  ;;  %v5671_v53 = vpop.permute.xlu1 %725 }
 0x155   : > { %v2117_v22 = vmul.f32 %v5624_v33, %v5498_v42  ;;  %v5660_v62 = vmul.f32 %v6955_v20, %v6954_v50  ;;  %4414 = vmatmul.mubr.msk.f32.gmra.mrb[2].mxu1 %vm1013_vm2, %v1751_v13  ;;  %v952_v1 = vadd.f32 %v920_v0, %v6957_v41  ;;  %v922_v25 = vmul.f32 %v5486_v28, %v5638_v35  ;;  %v6962_v50 = vld [vmem:[#allocation36_spill] sm:$0xff]  ;;  %v6964_v13 = vld [vmem:[#allocation18_spill] sm:$0xff] }
 0x156   : > { %4669 = vmatpush3.bf16.msra.mxu0 %v5418_v61  ;;  %v5669_v36 = vmul.f32 %v6959_v15, %v6958_v40  ;;  %6961 = vst [vmem:[#allocation12_spill] sm:$0xff] %v5671_v53  ;;  %4701 = vmatpush3.bf16.msra.mxu1 %v6950_v4  ;;  %v983_v20 = vmax.f32 %v951_v9, 0.0  ;;  %v953_v29 = vadd.f32 %v921_v17, %v6962_v50  ;;  %v6963_v0 = vsub.s32 4, %v5347_v38  ;;  %v6965_v15 = vld [vmem:[#allocation27_spill] sm:$0xff]  ;;  %v6966_v9 = vld [vmem:[#allocation14_spill] sm:$0xff] }
 0x157   : > { %6956 = vst [vmem:[#allocation33_spill] sm:$0xff] %v5660_v62  ;;  %4416 = vmatprep.mubr.msk.f32.mxu1 %vm1013_vm2, %v1752_v24  ;;  %v2118_v10 = vmul.f32 %v5624_v33, %v5480_v12  ;;  %4703 = vmatprep.subr.bf16.mxu1 %v6950_v4  ;;  %v1753_v40 = vmax.f32 %v1721_v43, 0.0  ;;  %v1723_v44 = vadd.f32 %v1691_v46, %v6965_v15  ;;  %v5695_v43 = vpop.permute.xlu0 %516  ;;  %v984_v46 = vmax.f32 %v952_v1, 0.0 }
 0x158   : > { %6960 = vst [vmem:[#allocation21_spill] sm:$0xff] %v5669_v36  ;;  %v2673_v42 = vrot.slane %v6964_v13, %v6963_v0  ;;  %4253 = vmatmul.mubr.msk.f32.gmra.mrb[6].mxu0 %vm1013_vm2, %v982_v26  ;;  %v923_v24 = vmul.f32 %v5486_v28, %v5660_v62  ;;  %v5688_v17 = vmul.f32 %v6967_v30, %v6966_v9  ;;  %v1754_v0 = vmax.f32 %v1722_v37, 0.0  ;;  %v6969_v26 = vld [vmem:[#allocation38_spill] sm:$0xff]  ;;  %v6970_v37 = vld [vmem:[#allocation15_spill] sm:$0xff]  ;;  %v6972_v9 = vld [vmem:[#allocation40_spill] sm:$0xff] }
 0x159   : > { %4255 = vmatprep.mubr.msk.f32.mxu0 %vm1013_vm2, %v983_v20  ;;  %v2149_v14 = vadd.f32 %v2117_v22, %v5416_v54  ;;  %v2119_v12 = vmul.f32 %v5624_v33, %v5563_v52  ;;  %4671 = vmatprep.subr.bf16.mxu0 %v5418_v61  ;;  %v954_v15 = vadd.f32 %v922_v25, %v6969_v26  ;;  %v985_v20 = vmax.f32 %v953_v29, 0.0 }
 0x15a   : > { %6968 = vst [vmem:[#allocation35_spill] sm:$0xff] %v5688_v17  ;;  %4417 = vmatmul.mubr.msk.f32.gmra.mrb[4].mxu1 %vm1013_vm2, %v1753_v40  ;;  %v924_v30 = vmul.f32 %v5486_v28, %v5669_v36  ;;  %4673 = vmatpush3.bf16.msra.mxu0 %v5418_v61  ;;  %v5704_v22 = vmul.f32 %v5463_v49, %v6970_v37  ;;  %v1755_v40 = vmax.f32 %v1723_v44, 0.0  ;;  %v6973_v37 = vld [vmem:[#allocation16_spill] sm:$0xff] }
 0x15b   : > { %4705 = vmatpush3.bf16.msra.mxu1 %v6950_v4  ;;  %4419 = vmatprep.mubr.msk.f32.mxu1 %vm1013_vm2, %v1754_v0  ;;  %v955_v52 = vadd.f32 %v923_v24, %v6972_v9  ;;  %v925_v1 = vmul.f32 %v5486_v28, %v5688_v17  ;;  %v2150_v25 = vadd.f32 %v2118_v10, %v5423_v47  ;;  %v5722_v24 = vpop.permute.xlu1 %730  ;;  %v2181_v0 = vmax.f32 %v2149_v14, 0.0 }
 0x15c   : > { %6971 = vst [vmem:[#allocation13_spill] sm:$0xff] %v5704_v22  ;;  %4707 = vmatprep.subr.bf16.mxu1 %v6950_v4  ;;  %4256 = vmatmul.mubr.msk.f32.gmra.mrb[8].mxu0 %vm1013_vm2, %v984_v46  ;;  %v5714_v54 = vpack.c.bf16 %v2673_v42, %v2673_v42  ;;  %v2120_v49 = vmul.f32 %v5624_v33, %v5567_v5  ;;  %6974 = vst [vmem:[#allocation37_spill] sm:$0xff] %v5722_v24  ;;  %v986_v42 = vmax.f32 %v954_v15, 0.0 }
 0x15d   : > { %v5720_v29 = vmul.f32 %v5467_v7, %v6973_v37  ;;  %4258 = vmatprep.mubr.msk.f32.mxu0 %vm1013_vm2, %v985_v20  ;;  %v2151_v10 = vadd.f32 %v2119_v12, %v5427_v45  ;;  %v2121_v46 = vmul.f32 %v5624_v33, %v5571_v59  ;;  %4675 = vmatprep.subr.bf16.mxu0 %v5418_v61  ;;  %v987_v14 = vmax.f32 %v955_v52, 0.0  ;;  %v6975_v37 = vld [vmem:[#allocation17_spill] sm:$0xff] }
 0x15e   : > { %4420 = vmatmul.mubr.msk.f32.gmra.mrb[6].mxu1 %vm1013_vm2, %v1755_v40  ;;  %v956_v44 = vadd.f32 %v924_v30, %v5465_v18  ;;  %v926_v7 = vmul.f32 %v5486_v28, %v5704_v22  ;;  %4677 = vmatpush3.bf16.msra.mxu0 %v5418_v61  ;;  %v957_v12 = vadd.f32 %v925_v1, %v5469_v8  ;;  %v6976_v40 = vld [vmem:[#allocation41_spill] sm:$0xff]  ;;  %v522_v30 = vpop.permute.xlu0 %521  ;;  %v2182_v59 = vmax.f32 %v2150_v25, 0.0 }
 0x15f   : > { %4709 = vmatpush3.bf16.msra.mxu1 %v6950_v4  ;;  %4438 = vmatprep.mubr.msk.f32.mxu1 %vm1013_vm2, %v2181_v0  ;;  %v927_v20 = vmul.f32 %v5486_v28, %v5720_v29  ;;  %v5741_v15 = vmul.f32 %v6976_v40, %v6975_v37  ;;  %v2152_v61 = vadd.f32 %v2120_v49, %v5431_v27  ;;  %v6978_v4 = vld [vmem:[#allocation3_spill] sm:$0xff]  ;;  %v2183_v0 = vmax.f32 %v2151_v10, 0.0 }
 0x160   : > { %4711 = vmatprep.subr.bf16.mxu1 %v5714_v54  ;;  %4259 = vmatmul.mubr.msk.f32.gmra.mrb[10].mxu0 %vm1013_vm2, %v986_v42  ;;  %v2122_v52 = vmul.f32 %v5624_v33, %v5575_v60  ;;  %v5750_v1 = vmul.f32 %v5477_v48, %v6978_v4  ;;  %v2153_v37 = vadd.f32 %v2121_v46, %v5435_v19  ;;  %v6980_v40 = vld [vmem:[#allocation19_spill] sm:$0xff]  ;;  %v988_v49 = vmax.f32 %v956_v44, 0.0  ;;  %v6981_v42 = vld [vmem:[#allocation42_spill] sm:$0xff]  ;;  %v5761_v48 = vpop.permute.xlu1 %735  ;;  %v6983_v4 = vld [vmem:[#allocation4_spill] sm:$0xff] }
 0x161   : > { %6977 = vst [vmem:[#allocation36_spill] sm:$0xff] %v5741_v15  ;;  %4261 = vmatprep.mubr.msk.f32.mxu0 %vm1013_vm2, %v987_v14  ;;  %v2123_v25 = vmul.f32 %v5624_v33, %v5604_v51  ;;  %4679 = vmatprep.subr.bf16.mxu0 %v6980_v40  ;;  %v958_v27 = vadd.f32 %v926_v7, %v6981_v42  ;;  %6982 = vst [vmem:[#allocation14_spill] sm:$0xff] %v5761_v48  ;;  %v989_v10 = vmax.f32 %v957_v12, 0.0  ;;  %v6985_v12 = vld [vmem:[#allocation5_spill] sm:$0xff] }
 0x162   : > { %6979 = vst [vmem:[#allocation18_spill] sm:$0xff] %v5750_v1  ;;  %4439 = vmatmul.mubr.msk.f32.vlgmr.msra.gmra.mrb[8].mxu1 %vm1013_vm2, %v2182_v59  ;;  %v928_v60 = vmul.f32 %v5486_v28, %v5741_v15  ;;  %v959_v46 = vadd.f32 %v927_v20, %v5500_v11  ;;  %v929_v14 = vmul.f32 %v5486_v28, %v5750_v1  ;;  %v2184_v44 = vmax.f32 %v2152_v61, 0.0  ;;  %v527_v61 = vpop.permute.xlu0 %526 }
 0x163   : > { %4713 = vmatpush3.bf16.msra.mxu1 %v5714_v54  ;;  %4441 = vmatprep.mubr.msk.f32.mxu1 %vm1013_vm2, %v2183_v0  ;;  %v5770_v59 = vmul.f32 %v5548_v2, %v6983_v4  ;;  %v2154_v7 = vadd.f32 %v2122_v52, %v5440_v56  ;;  %v2124_v40 = vmul.f32 %v5624_v33, %v5608_v23  ;;  %v2185_v0 = vmax.f32 %v2153_v37, 0.0  ;;  %v6987_v56 = vld [vmem:[#allocation6_spill] sm:$0xff] }
 0x164   : > { %4262 = vmatmul.mubr.msk.f32.gmra.mrb[12].mxu0 %vm1013_vm2, %v988_v49  ;;  %4715 = vmatprep.subr.bf16.mxu1 %v5714_v54  ;;  %v5779_v20 = vmul.f32 %v5595_v6, %v6985_v12  ;;  %v2155_v2 = vadd.f32 %v2123_v25, %v6952_v31  ;;  %v2125_v49 = vmul.f32 %v5624_v33, %v5616_v16  ;;  %v990_v52 = vmax.f32 %v958_v27, 0.0  ;;  %v5810_v12 = vpop.permute.xlu1 %740 }
 0x165   : > { %6984 = vst [vmem:[#allocation39_spill] sm:$0xff] %v5770_v59  ;;  %4264 = vmatprep.mubr.msk.f32.mxu0 %vm1013_vm2, %v989_v10  ;;  %v960_v4 = vadd.f32 %v928_v60, %v5577_v21  ;;  %v930_v23 = vmul.f32 %v5486_v28, %v5770_v59  ;;  %v5791_v6 = vmul.f32 %v5646_v39, %v6987_v56  ;;  %v991_v37 = vmax.f32 %v959_v46, 0.0  ;;  %v6990_v46 = vld [vmem:[#allocation7_spill] sm:$0xff] }
 0x166   : > { %6986 = vst [vmem:[#allocation15_spill] sm:$0xff] %v5779_v20  ;;  %4442 = vmatmul.mubr.msk.f32.gmra.mrb[10].mxu1 %vm1013_vm2, %v2184_v44  ;;  %v961_v25 = vadd.f32 %v929_v14, %v5620_v32  ;;  %v931_v10 = vmul.f32 %v5486_v28, %v5779_v20  ;;  %v2186_v27 = vmax.f32 %v2154_v7, 0.0  ;;  %v2156_v60 = vadd.f32 %v2124_v40, %v6957_v41 }
 0x167   : > { %6988 = vst [vmem:[#allocation40_spill] sm:$0xff] %v5791_v6  ;;  %4444 = vmatprep.mubr.msk.f32.mxu1 %vm1013_vm2, %v2185_v0  ;;  %4717 = vmatpush3.bf16.msra.mxu1 %v5714_v54  ;;  %v2126_v44 = vmul.f32 %v5624_v33, %v5638_v35  ;;  %v6989_v56 = vsub.s32 5, %v5347_v38  ;;  %v5808_v14 = vmul.f32 %v5695_v43, %v6990_v46  ;;  %v2187_v7 = vmax.f32 %v2155_v2, 0.0  ;;  %v6992_v43 = vld [vmem:[#allocation8_spill] sm:$0xff] }
 0x168   : > { %4265 = vmatmul.mubr.msk.f32.gmra.mrb[14].mxu0 %vm1013_vm2, %v990_v52  ;;  %4719 = vmatprep.subr.bf16.mxu1 %v5714_v54  ;;  %v2157_v40 = vadd.f32 %v2125_v49, %v6962_v50  ;;  %v2127_v0 = vmul.f32 %v5624_v33, %v5660_v62  ;;  %v992_v52 = vmax.f32 %v960_v4, 0.0  ;;  %v962_v38 = vadd.f32 %v930_v23, %v5671_v53 }
 0x169   : > { %v3130_v39 = vrot.slane %v6964_v13, %v6989_v56  ;;  %6991 = vst [vmem:[#allocation16_spill] sm:$0xff] %v5808_v14  ;;  %4267 = vmatprep.mubr.msk.f32.mxu0 %vm1013_vm2, %v991_v37  ;;  %v932_v13 = vmul.f32 %v5486_v28, %v5791_v6  ;;  %v5821_v56 = vmul.f32 %v522_v30, %v6992_v43  ;;  %v993_v37 = vmax.f32 %v961_v25, 0.0  ;;  %v6995_v25 = vld [vmem:[#allocation9_spill] sm:$0xff] }
 0x16a   : > { %4445 = vmatmul.mubr.msk.f32.gmra.mrb[12].mxu1 %vm1013_vm2, %v2186_v27  ;;  %v963_v2 = vadd.f32 %v931_v10, %v5722_v24  ;;  %v933_v49 = vmul.f32 %v5486_v28, %v5808_v14  ;;  %v532_v27 = vpop.permute.xlu0 %531  ;;  %v2188_v23 = vmax.f32 %v2156_v60, 0.0  ;;  %v2158_v4 = vadd.f32 %v2126_v44, %v6969_v26 }
 0x16b   : > { %6993 = vst [vmem:[#allocation17_spill] sm:$0xff] %v5821_v56  ;;  %4447 = vmatprep.mubr.msk.f32.mxu1 %vm1013_vm2, %v2187_v7  ;;  %4721 = vmatpush3.bf16.msra.mxu1 %v5714_v54  ;;  %v2128_v30 = vmul.f32 %v5624_v33, %v5669_v36  ;;  %v5833_v46 = vpack.c.bf16 %v3130_v39, %v3130_v39  ;;  %v2189_v7 = vmax.f32 %v2157_v40, 0.0  ;;  %v994_v44 = vmax.f32 %v962_v38, 0.0  ;;  %v5846_v36 = vpop.permute.xlu1 %745 }
 0x16c   : > { %4268 = vmatmul.mubr.msk.f32.gmra.mrb[16].mxu0 %vm1013_vm2, %v992_v52  ;;  %4723 = vmatprep.subr.bf16.mxu1 %v5714_v54  ;;  %v5836_v10 = vmul.f32 %v527_v61, %v6995_v25  ;;  %v2159_v43 = vadd.f32 %v2127_v0, %v6972_v9  ;;  %v2129_v60 = vmul.f32 %v5624_v33, %v5688_v17  ;;  %v995_v61 = vmax.f32 %v963_v2, 0.0 }
 0x16d   : > { %6994 = vst [vmem:[#allocation41_spill] sm:$0xff] %v5833_v46  ;;  %4270 = vmatprep.mubr.msk.f32.mxu0 %vm1013_vm2, %v993_v37  ;;  %v964_v52 = vadd.f32 %v932_v13, %v5761_v48  ;;  %v934_v39 = vmul.f32 %v5486_v28, %v5821_v56  ;;  %6997 = vst [vmem:[#allocation42_spill] sm:$0xff] %v5846_v36  ;;  %v965_v40 = vadd.f32 %v933_v49, %v5810_v12  ;;  %v6998_v37 = vld [vmem:[#allocation10_spill] sm:$0xff] }
 0x16e   : > { %6996 = vst [vmem:[#allocation3_spill] sm:$0xff] %v5836_v10  ;;  %4448 = vmatmul.mubr.msk.f32.gmra.mrb[14].mxu1 %vm1013_vm2, %v2188_v23  ;;  %v935_v0 = vmul.f32 %v5486_v28, %v5836_v10  ;;  %v5854_v23 = vmul.f32 %v532_v27, %v6998_v37  ;;  %v2190_v38 = vmax.f32 %v2158_v4, 0.0  ;;  %v2160_v13 = vadd.f32 %v2128_v30, %v5465_v18  ;;  %v5865_v27 = vpop.permute.xlu0 %750 }
 0x16f   : > { %4450 = vmatprep.mubr.msk.f32.mxu1 %vm1013_vm2, %v2189_v7  ;;  %4725 = vmatpush3.bf16.msra.mxu1 %v5714_v54  ;;  %v2130_v25 = vmul.f32 %v5624_v33, %v5704_v22  ;;  %v2191_v2 = vmax.f32 %v2159_v43, 0.0  ;;  %v2161_v49 = vadd.f32 %v2129_v60, %v5469_v8  ;;  %v2131_v54 = vmul.f32 %v5624_v33, %v5720_v29 }
 0x170   : > { %6999 = vst [vmem:[#allocation4_spill] sm:$0xff] %v5854_v23  ;;  %4271 = vmatmul.mubr.msk.f32.gmra.mrb[18].mxu0 %vm1013_vm2, %v994_v44  ;;  %4727 = vmatprep.subr.bf16.mxu1 %v5833_v46  ;;  %v996_v4 = vmax.f32 %v964_v52, 0.0  ;;  %v966_v30 = vadd.f32 %v934_v39, %v5846_v36  ;;  %v936_v7 = vmul.f32 %v5486_v28, %v5854_v23  ;;  %v997_v44 = vmax.f32 %v965_v40, 0.0  ;;  %v5879_v39 = vpop.permute.xlu1 %755 }
 0x171   : > { %4273 = vmatprep.mubr.msk.f32.mxu0 %vm1013_vm2, %v995_v61  ;;  %v967_v43 = vadd.f32 %v935_v0, %v5865_v27  ;;  %v937_v60 = vmul.f32 %v5486_v28, %v5494_v58  ;;  %v2192_v61 = vmax.f32 %v2160_v13, 0.0  ;;  %v2162_v37 = vadd.f32 %v2130_v25, %v6981_v42 }
 0x172   : > { %4451 = vmatmul.mubr.msk.f32.gmra.mrb[16].mxu1 %vm1013_vm2, %v2190_v38  ;;  %v2132_v52 = vmul.f32 %v5624_v33, %v5741_v15  ;;  %v2193_v38 = vmax.f32 %v2161_v49, 0.0  ;;  %v2163_v40 = vadd.f32 %v2131_v54, %v5500_v11  ;;  %v2133_v0 = vmul.f32 %v5624_v33, %v5750_v1 }
 0x173   : > { %4453 = vmatprep.mubr.msk.f32.mxu1 %vm1013_vm2, %v2191_v2  ;;  %v998_v2 = vmax.f32 %v966_v30, 0.0  ;;  %v968_v13 = vadd.f32 %v936_v7, %v5879_v39  ;;  %v938_v25 = vmul.f32 %v5486_v28, %v5516_v34  ;;  %v969_v46 = vadd.f32 %v937_v60, %v5372_v63 }
 0x174   : > { %4274 = vmatmul.mubr.msk.f32.gmra.mrb[20].mxu0 %vm1013_vm2, %v996_v4  ;;  %v999_v4 = vmax.f32 %v967_v43, 0.0  ;;  %v939_v49 = vmul.f32 %v5486_v28, %v5512_v57  ;;  %v2194_v54 = vmax.f32 %v2162_v37, 0.0  ;;  %v2134_v30 = vmul.f32 %v5624_v33, %v5770_v59 }
 0x175   : > { %4276 = vmatprep.mubr.msk.f32.mxu0 %vm1013_vm2, %v997_v44  ;;  %v2164_v44 = vadd.f32 %v2132_v52, %v5577_v21  ;;  %v2195_v7 = vmax.f32 %v2163_v40, 0.0  ;;  %v2135_v43 = vmul.f32 %v5624_v33, %v5779_v20  ;;  %v1000_v60 = vmax.f32 %v968_v13, 0.0 }
 0x176   : > { %4454 = vmatmul.mubr.msk.f32.gmra.mrb[18].mxu1 %vm1013_vm2, %v2192_v61  ;;  %v2165_v61 = vadd.f32 %v2133_v0, %v5620_v32  ;;  %v940_v37 = vmul.f32 %v5486_v28, %v5538_v55  ;;  %v1001_v52 = vmax.f32 %v969_v46, 0.0  ;;  %v2166_v20 = vadd.f32 %v2134_v30, %v5671_v53 }
 0x177   : > { %4456 = vmatprep.mubr.msk.f32.mxu1 %vm1013_vm2, %v2193_v38  ;;  %v970_v38 = vadd.f32 %v938_v25, %v5378_v3  ;;  %v2196_v0 = vmax.f32 %v2164_v44, 0.0  ;;  %v2136_v13 = vmul.f32 %v5624_v33, %v5791_v6  ;;  %v2137_v46 = vmul.f32 %v5624_v33, %v5808_v14  ;;  %v7004_v6 = vld [vmem:[#allocation24_spill] sm:$0xff] }
 0x178   : > { %4277 = vmatmul.mubr.msk.f32.gmra.mrb[22].mxu0 %vm1013_vm2, %v998_v2  ;;  %v7000_v2 = vld [vmem:[#allocation22_spill] sm:$0xff]  ;;  %v2197_v25 = vmax.f32 %v2165_v61, 0.0 }
 0x179   : > { %4279 = vmatprep.mubr.msk.f32.mxu0 %vm1013_vm2, %v999_v4  ;;  %v971_v59 = vadd.f32 %v939_v49, %v7000_v2  ;;  %v7001_v4 = vld [vmem:[#allocation54_spill] sm:$0xff]  ;;  %v1002_v49 = vmax.f32 %v970_v38, 0.0  ;;  %v2168_v14 = vadd.f32 %v2136_v13, %v5761_v48  ;;  %v2138_v38 = vmul.f32 %v5624_v33, %v5821_v56 }
 0x17a   : > { %4457 = vmatmul.mubr.msk.f32.gmra.mrb[20].mxu1 %vm1013_vm2, %v2194_v54  ;;  %v941_v40 = vmul.f32 %v5486_v28, %v7001_v4  ;;  %v2167_v54 = vadd.f32 %v2135_v43, %v5722_v24  ;;  %v2198_v43 = vmax.f32 %v2166_v20, 0.0  ;;  %v7008_v56 = vld [vmem:[#allocation26_spill] sm:$0xff] }
 0x17b   : > { %4459 = vmatprep.mubr.msk.f32.mxu1 %vm1013_vm2, %v2195_v7  ;;  %v7002_v7 = vld [vmem:[#allocation23_spill] sm:$0xff]  ;;  %v1003_v30 = vmax.f32 %v971_v59, 0.0  ;;  %v2139_v59 = vmul.f32 %v5624_v33, %v5836_v10  ;;  %v2170_v10 = vadd.f32 %v2138_v38, %v5846_v36  ;;  %v7012_v38 = vld [vmem:[#allocation28_spill] sm:$0xff]  ;;  %v7013_v36 = vld [vmem:[#allocation58_spill] sm:$0xff] }
 0x17c   : > { %4280 = vmatmul.mubr.msk.f32.gmra.mrb[24].mxu0 %vm1013_vm2, %v1000_v60  ;;  %v972_v32 = vadd.f32 %v940_v37, %v7002_v7  ;;  %v7003_v60 = vld [vmem:[#allocation55_spill] sm:$0xff]  ;;  %v973_v53 = vadd.f32 %v941_v40, %v7004_v6  ;;  %v2199_v37 = vmax.f32 %v2167_v54, 0.0  ;;  %v7010_v54 = vld [vmem:[#allocation44_spill] sm:$0xff] }
 0x17d   : > { %4282 = vmatprep.mubr.msk.f32.mxu0 %vm1013_vm2, %v1001_v52  ;;  %v942_v44 = vmul.f32 %v5486_v28, %v7003_v60  ;;  %v7005_v52 = vld [vmem:[#allocation56_spill] sm:$0xff] }
 0x17e   : > { %4460 = vmatmul.mubr.msk.f32.gmra.mrb[22].mxu1 %vm1013_vm2, %v2196_v0  ;;  %v943_v61 = vmul.f32 %v5486_v28, %v7005_v52  ;;  %v2169_v0 = vadd.f32 %v2137_v46, %v5810_v12  ;;  %v1004_v40 = vmax.f32 %v972_v32, 0.0  ;;  %v1005_v13 = vmax.f32 %v973_v53, 0.0 }
 0x17f   : > { %4462 = vmatprep.mubr.msk.f32.mxu1 %vm1013_vm2, %v2197_v25  ;;  %v7006_v25 = vld [vmem:[#allocation25_spill] sm:$0xff]  ;;  %v2200_v46 = vmax.f32 %v2168_v14, 0.0  ;;  %v2140_v32 = vmul.f32 %v5624_v33, %v5854_v23  ;;  %v2141_v53 = vmul.f32 %v5624_v33, %v5494_v58  ;;  %v811_v23 = vmul.f32 %v7010_v54, %v7013_v36 }
 0x180   : > { %4283 = vmatmul.mubr.msk.f32.gmra.mrb[26].mxu0 %vm1013_vm2, %v1002_v49  ;;  %v974_v24 = vadd.f32 %v942_v44, %v7006_v25  ;;  %v7007_v49 = vld [vmem:[#allocation57_spill] sm:$0xff]  ;;  %v975_v48 = vadd.f32 %v943_v61, %v7008_v56  ;;  %v2201_v44 = vmax.f32 %v2169_v0, 0.0  ;;  %v2202_v0 = vmax.f32 %v2170_v10, 0.0 }
 0x181   : > { %4285 = vmatprep.mubr.msk.f32.mxu0 %vm1013_vm2, %v1003_v30  ;;  %v944_v20 = vmul.f32 %v5486_v28, %v7007_v49  ;;  %v7009_v30 = vld [vmem:[#allocation46_spill] sm:$0xff]  ;;  %v2171_v28 = vadd.f32 %v2139_v59, %v5865_v27  ;;  %v2172_v59 = vadd.f32 %v2140_v32, %v5879_v39  ;;  %v812_v10 = vmul.f32 %v7010_v54, %v5567_v5 }
 0x182   : > { %4463 = vmatmul.mubr.msk.f32.gmra.mrb[24].mxu1 %vm1013_vm2, %v2198_v43  ;;  %v809_v21 = vmul.f32 %v7010_v54, %v7009_v30  ;;  %v1006_v61 = vmax.f32 %v974_v24, 0.0  ;;  %v7011_v43 = vld [vmem:[#allocation27_spill] sm:$0xff]  ;;  %v1007_v14 = vmax.f32 %v975_v48, 0.0  ;;  %v2143_v48 = vmul.f32 %v5624_v33, %v5512_v57 }
 0x183   : > { %4465 = vmatprep.mubr.msk.f32.mxu1 %vm1013_vm2, %v2199_v37  ;;  %v976_v37 = vadd.f32 %v944_v20, %v7011_v43  ;;  %v2203_v24 = vmax.f32 %v2171_v28, 0.0  ;;  %v2173_v20 = vadd.f32 %v2141_v53, %v5372_v63  ;;  %v7015_v28 = vld [vmem:[#allocation59_spill] sm:$0xff] }
 0x184   : > { %4286 = vmatmul.mubr.msk.f32.gmra.mrb[28].mxu0 %vm1013_vm2, %v1004_v40  ;;  %v841_v40 = vadd.f32 %v809_v21, %v7012_v38  ;;  %v7014_v21 = vld [vmem:[#allocation50_spill] sm:$0xff]  ;;  %v813_v53 = vmul.f32 %v7010_v54, %v7015_v28 }
 0x185   : > { %4288 = vmatprep.mubr.msk.f32.mxu0 %vm1013_vm2, %v1005_v13  ;;  %v2142_v13 = vmul.f32 %v5624_v33, %v5516_v34 }
 0x186   : > { %4466 = vmatmul.mubr.msk.f32.gmra.mrb[26].mxu1 %vm1013_vm2, %v2200_v46  ;;  %v842_v46 = vadd.f32 %v7014_v21, %v5423_v47  ;;  %v873_v32 = vmax.f32 %v841_v40, 0.0  ;;  %v2175_v21 = vadd.f32 %v2143_v48, %v7000_v2  ;;  %v2145_v40 = vmul.f32 %v5624_v33, %v7001_v4  ;;  %v7020_v4 = vld [vmem:[#allocation63_spill] sm:$0xff] }
 0x187   : > { %4468 = vmatprep.mubr.msk.f32.mxu1 %vm1013_vm2, %v2201_v44  ;;  %v1008_v44 = vmax.f32 %v976_v37, 0.0  ;;  %v2174_v57 = vadd.f32 %v2142_v13, %v5378_v3  ;;  %v2205_v37 = vmax.f32 %v2173_v20, 0.0  ;;  %v815_v20 = vmul.f32 %v7010_v54, %v5604_v51 }
 0x188   : > { %4289 = vmatmul.mubr.msk.f32.gmra.mrb[30].mxu0 %vm1013_vm2, %v1006_v61  ;;  %v843_v61 = vadd.f32 %v811_v23, %v5427_v45  ;;  %v874_v23 = vmax.f32 %v842_v46, 0.0 }
 0x189   : > { %4291 = vmatprep.mubr.msk.f32.mxu0 %vm1013_vm2, %v1007_v14  ;;  %v2204_v14 = vmax.f32 %v2172_v59, 0.0  ;;  %v2206_v48 = vmax.f32 %v2174_v57, 0.0 }
 0x18a   : > { %4469 = vmatmul.mubr.msk.f32.gmra.mrb[28].mxu1 %vm1013_vm2, %v2202_v0  ;;  %v2144_v0 = vmul.f32 %v5624_v33, %v5538_v55  ;;  %v875_v13 = vmax.f32 %v843_v61, 0.0  ;;  %v845_v55 = vadd.f32 %v813_v53, %v5435_v19  ;;  %v2147_v61 = vmul.f32 %v5624_v33, %v7005_v52  ;;  %v7018_v53 = vld [vmem:[#allocation19_spill] sm:$0xff] }
 0x18b   : > { %4471 = vmatprep.mubr.msk.f32.mxu1 %vm1013_vm2, %v2203_v24  ;;  %v7016_v24 = vld [vmem:[#allocation29_spill] sm:$0xff] }
 0x18c   : > { %4292 = vmatmul.mubr.msk.f32.gmra.mrb[32].mxu0 %vm1013_vm2, %v1008_v44  ;;  %v844_v63 = vadd.f32 %v812_v10, %v7016_v24  ;;  %v7017_v44 = vld [vmem:[#allocation60_spill] sm:$0xff]  ;;  %v2176_v46 = vadd.f32 %v2144_v0, %v7002_v7  ;;  %v2207_v10 = vmax.f32 %v2175_v21, 0.0  ;;  %v816_v0 = vmul.f32 %v7010_v54, %v7020_v4 }
 0x18d   : > { %4310 = vmatprep.mubr.msk.f32.mxu0 %vm1013_vm2, %v873_v32  ;;  %v814_v59 = vmul.f32 %v7010_v54, %v7017_v44  ;;  %v2146_v32 = vmul.f32 %v5624_v33, %v7003_v60  ;;  %v877_v21 = vmax.f32 %v845_v55, 0.0  ;;  %v7021_v55 = vld [vmem:[#allocation47_spill] sm:$0xff] }
 0x18e   : > { %4472 = vmatmul.mubr.msk.f32.gmra.mrb[30].mxu1 %vm1013_vm2, %v2204_v14  ;;  %v2177_v14 = vadd.f32 %v2145_v40, %v7004_v6  ;;  %v847_v40 = vadd.f32 %v815_v20, %v6952_v31  ;;  %v2208_v52 = vmax.f32 %v2176_v46, 0.0  ;;  %v2179_v6 = vadd.f32 %v2147_v61, %v7008_v56 }
 0x18f   : > { %4474 = vmatprep.mubr.msk.f32.mxu1 %vm1013_vm2, %v2205_v37  ;;  %v876_v37 = vmax.f32 %v844_v63, 0.0  ;;  %v2178_v63 = vadd.f32 %v2146_v32, %v7006_v25  ;;  %v848_v46 = vadd.f32 %v816_v0, %v6957_v41  ;;  %v818_v32 = vmul.f32 %v7010_v54, %v5638_v35 }
 0x190   : > { %4311 = vmatmul.mubr.msk.f32.vlgmr.msra.gmra.mrb[2].mxu0 %vm1013_vm2, %v874_v23  ;;  %v7019_v23 = vld [vmem:[#allocation31_spill] sm:$0xff]  ;;  %v819_v61 = vmul.f32 %v7010_v54, %v5660_v62 }
 0x191   : > { %4313 = vmatprep.mubr.msk.f32.mxu0 %vm1013_vm2, %v875_v13  ;;  %4681 = vmatpush3.bf16.msra.mxu0 %v7018_v53  ;;  %v846_v57 = vadd.f32 %v814_v59, %v7019_v23  ;;  %v817_v13 = vmul.f32 %v7010_v54, %v5616_v16  ;;  %v2148_v59 = vmul.f32 %v5624_v33, %v7007_v49  ;;  %v879_v33 = vmax.f32 %v847_v40, 0.0 }
 0x192   : > { %4475 = vmatmul.mubr.msk.f32.gmra.mrb[0].mxu1 %vm1013_vm2, %v2206_v48  ;;  %4683 = vmatprep.subr.bf16.mxu0 %v7018_v53  ;;  %v2209_v48 = vmax.f32 %v2177_v14, 0.0  ;;  %v880_v40 = vmax.f32 %v848_v46, 0.0 }
 0x193   : > { %4477 = vmatprep.mubr.msk.f32.mxu1 %vm1013_vm2, %v2207_v10  ;;  %v2574_v10 = vmul.f32 %v7021_v55, %v7009_v30  ;;  %v878_v20 = vmax.f32 %v846_v57, 0.0  ;;  %v849_v14 = vadd.f32 %v817_v13, %v6962_v50  ;;  %v2211_v57 = vmax.f32 %v2179_v6, 0.0 }
 0x194   : > { %4314 = vmatmul.mubr.msk.f32.gmra.mrb[4].mxu0 %vm1013_vm2, %v876_v37  ;;  %v2210_v37 = vmax.f32 %v2178_v63, 0.0  ;;  %v850_v13 = vadd.f32 %v818_v32, %v6969_v26  ;;  %v2577_v32 = vmul.f32 %v7021_v55, %v5567_v5 }
 0x195   : > { %4316 = vmatprep.mubr.msk.f32.mxu0 %vm1013_vm2, %v877_v21  ;;  %4685 = vmatpush3.bf16.msra.mxu0 %v7018_v53  ;;  %v2606_v0 = vadd.f32 %v2574_v10, %v7012_v38  ;;  %v2576_v21 = vmul.f32 %v7021_v55, %v7013_v36  ;;  %v881_v6 = vmax.f32 %v849_v14, 0.0  ;;  %v821_v10 = vmul.f32 %v7010_v54, %v5688_v17 }
 0x196   : > { %4478 = vmatmul.mubr.msk.f32.gmra.mrb[2].mxu1 %vm1013_vm2, %v2208_v52  ;;  %4687 = vmatprep.subr.bf16.mxu0 %v7018_v53  ;;  %v2180_v52 = vadd.f32 %v2148_v59, %v7011_v43  ;;  %v851_v59 = vadd.f32 %v819_v61, %v6972_v9  ;;  %v2578_v14 = vmul.f32 %v7021_v55, %v7015_v28  ;;  %v882_v61 = vmax.f32 %v850_v13, 0.0 }
 0x197   : > { %4480 = vmatprep.mubr.msk.f32.mxu1 %vm1013_vm2, %v2209_v48  ;;  %v7022_v48 = vld [vmem:[#allocation21_spill] sm:$0xff]  ;;  %v2579_v13 = vmul.f32 %v7021_v55, %v7017_v44 }
 0x198   : > { %4317 = vmatmul.mubr.msk.f32.gmra.mrb[6].mxu0 %vm1013_vm2, %v878_v20  ;;  %v820_v63 = vmul.f32 %v7010_v54, %v7022_v48  ;;  %v7023_v20 = vld [vmem:[#allocation51_spill] sm:$0xff]  ;;  %v2212_v46 = vmax.f32 %v2180_v52, 0.0  ;;  %v822_v52 = vmul.f32 %v7010_v54, %v5704_v22 }
 0x199   : > { %4319 = vmatprep.mubr.msk.f32.mxu0 %vm1013_vm2, %v879_v33  ;;  %4689 = vmatpush3.bf16.msra.mxu0 %v7018_v53  ;;  %v2607_v33 = vadd.f32 %v7023_v20, %v5423_v47 }
 0x19a   : > { %4481 = vmatmul.mubr.msk.f32.gmra.mrb[4].mxu1 %vm1013_vm2, %v2210_v37  ;;  %4691 = vmatprep.subr.bf16.mxu0 %v7018_v53  ;;  %v2638_v37 = vmax.f32 %v2606_v0, 0.0  ;;  %v852_v20 = vadd.f32 %v820_v63, %v5465_v18  ;;  %v853_v0 = vadd.f32 %v821_v10, %v5469_v8 }
 0x19b   : > { %4483 = vmatprep.mubr.msk.f32.mxu1 %vm1013_vm2, %v2211_v57  ;;  %v2608_v57 = vadd.f32 %v2576_v21, %v5427_v45  ;;  %v823_v21 = vmul.f32 %v7010_v54, %v5720_v29 }
 0x19c   : > { %4320 = vmatmul.mubr.msk.f32.gmra.mrb[8].mxu0 %vm1013_vm2, %v880_v40  ;;  %v883_v40 = vmax.f32 %v851_v59, 0.0  ;;  %v2580_v59 = vmul.f32 %v7021_v55, %v5604_v51  ;;  %v884_v10 = vmax.f32 %v852_v20, 0.0  ;;  %v2611_v20 = vadd.f32 %v2579_v13, %v7019_v23  ;;  %v7026_v51 = vld [vmem:[#allocation39_spill] sm:$0xff]  ;;  %v7027_v23 = vld [vmem:[#allocation65_spill] sm:$0xff] }
 0x19d   : > { %4322 = vmatprep.mubr.msk.f32.mxu0 %vm1013_vm2, %v881_v6  ;;  %4693 = vmatpush3.bf16.msra.mxu0 %v7018_v53  ;;  %v2639_v6 = vmax.f32 %v2607_v33, 0.0  ;;  %v2609_v53 = vadd.f32 %v2577_v32, %v7016_v24  ;;  %v2640_v63 = vmax.f32 %v2608_v57, 0.0  ;;  %v854_v33 = vadd.f32 %v822_v52, %v6981_v42  ;;  %v7024_v32 = vld [vmem:[#allocation41_spill] sm:$0xff] }
 0x19e   : > { %4484 = vmatmul.mubr.msk.f32.gmra.mrb[6].mxu1 %vm1013_vm2, %v2212_v46  ;;  %v2610_v46 = vadd.f32 %v2578_v14, %v5435_v19  ;;  %v855_v57 = vadd.f32 %v823_v21, %v5500_v11  ;;  %v825_v14 = vmul.f32 %v7010_v54, %v5750_v1  ;;  %v2581_v52 = vmul.f32 %v7021_v55, %v7020_v4 }
 0x19f   : > { %4502 = vmatprep.mubr.msk.f32.mxu1 %vm1013_vm2, %v2638_v37  ;;  %v824_v37 = vmul.f32 %v7010_v54, %v5741_v15  ;;  %v2582_v21 = vmul.f32 %v7021_v55, %v5616_v16  ;;  %v826_v13 = vmul.f32 %v7010_v54, %v7026_v51  ;;  %v7030_v16 = vld [vmem:[#allocation40_spill] sm:$0xff] }
 0x1a0   : > { %4323 = vmatmul.mubr.msk.f32.gmra.mrb[10].mxu0 %vm1013_vm2, %v882_v61  ;;  %v885_v61 = vmax.f32 %v853_v0, 0.0  ;;  %v2612_v0 = vadd.f32 %v2580_v59, %v6952_v31  ;;  %v887_v4 = vmax.f32 %v855_v57, 0.0  ;;  %v857_v19 = vadd.f32 %v825_v14, %v7027_v23 }
 0x1a1   : > { %4325 = vmatprep.mubr.msk.f32.mxu0 %vm1013_vm2, %v883_v40  ;;  %v2641_v40 = vmax.f32 %v2609_v53, 0.0  ;;  %v2614_v14 = vadd.f32 %v2582_v21, %v6962_v50 }
 0x1a2   : > { %4503 = vmatmul.mubr.msk.f32.vlgmr.msra.gmra.mrb[8].mxu1 %vm1013_vm2, %v2639_v6  ;;  %v2642_v6 = vmax.f32 %v2610_v46, 0.0  ;;  %v7028_v46 = vld [vmem:[#allocation15_spill] sm:$0xff]  ;;  %v2644_v57 = vmax.f32 %v2612_v0, 0.0 }
 0x1a3   : > { %4729 = vmatpush3.bf16.msra.mxu1 %v7024_v32  ;;  %4505 = vmatprep.mubr.msk.f32.mxu1 %vm1013_vm2, %v2640_v63  ;;  %v886_v63 = vmax.f32 %v854_v33, 0.0  ;;  %v827_v59 = vmul.f32 %v7010_v54, %v7028_v46  ;;  %v2613_v33 = vadd.f32 %v2581_v52, %v6957_v41  ;;  %v828_v52 = vmul.f32 %v7010_v54, %v7030_v16  ;;  %v7031_v41 = vld [vmem:[#allocation37_spill] sm:$0xff] }
 0x1a4   : > { %4326 = vmatmul.mubr.msk.f32.gmra.mrb[12].mxu0 %vm1013_vm2, %v884_v10  ;;  %4731 = vmatprep.subr.bf16.mxu1 %v7024_v32  ;;  %v7025_v10 = vld [vmem:[#allocation61_spill] sm:$0xff] }
 0x1a5   : > { %4328 = vmatprep.mubr.msk.f32.mxu0 %vm1013_vm2, %v885_v61  ;;  %v856_v53 = vadd.f32 %v824_v37, %v7025_v10  ;;  %v2643_v61 = vmax.f32 %v2611_v20, 0.0  ;;  %v2583_v37 = vmul.f32 %v7021_v55, %v5638_v35  ;;  %v889_v35 = vmax.f32 %v857_v19, 0.0 }
 0x1a6   : > { %4506 = vmatmul.mubr.msk.f32.gmra.mrb[10].mxu1 %vm1013_vm2, %v2641_v40  ;;  %v2584_v40 = vmul.f32 %v7021_v55, %v5660_v62  ;;  %v859_v31 = vadd.f32 %v827_v59, %v7031_v41  ;;  %v2645_v21 = vmax.f32 %v2613_v33, 0.0  ;;  %v2646_v19 = vmax.f32 %v2614_v14, 0.0  ;;  %v7034_v62 = vld [vmem:[#allocation17_spill] sm:$0xff] }
 0x1a7   : > { %4508 = vmatprep.mubr.msk.f32.mxu1 %vm1013_vm2, %v2642_v6  ;;  %4733 = vmatpush3.bf16.msra.mxu1 %v7024_v32  ;;  %v888_v6 = vmax.f32 %v856_v53, 0.0  ;;  %v2615_v53 = vadd.f32 %v2583_v37, %v6969_v26  ;;  %v830_v37 = vmul.f32 %v7010_v54, %v7034_v62 }
 0x1a8   : > { %4329 = vmatmul.mubr.msk.f32.gmra.mrb[14].mxu0 %vm1013_vm2, %v886_v63  ;;  %4735 = vmatprep.subr.bf16.mxu1 %v7024_v32  ;;  %v7029_v63 = vld [vmem:[#allocation12_spill] sm:$0xff]  ;;  %v2616_v59 = vadd.f32 %v2584_v40, %v6972_v9 }
 0x1a9   : > { %4331 = vmatprep.mubr.msk.f32.mxu0 %vm1013_vm2, %v887_v4  ;;  %v858_v20 = vadd.f32 %v826_v13, %v7029_v63  ;;  %v7032_v4 = vld [vmem:[#allocation16_spill] sm:$0xff]  ;;  %v2585_v13 = vmul.f32 %v7021_v55, %v7022_v48  ;;  %v891_v48 = vmax.f32 %v859_v31, 0.0  ;;  %v2647_v40 = vmax.f32 %v2615_v53, 0.0 }
 0x1aa   : > { %4509 = vmatmul.mubr.msk.f32.gmra.mrb[12].mxu1 %vm1013_vm2, %v2643_v61  ;;  %v829_v0 = vmul.f32 %v7010_v54, %v7032_v4  ;;  %v2586_v61 = vmul.f32 %v7021_v55, %v5688_v17 }
 0x1ab   : > { %4511 = vmatprep.mubr.msk.f32.mxu1 %vm1013_vm2, %v2644_v57  ;;  %4737 = vmatpush3.bf16.msra.mxu1 %v7024_v32  ;;  %v890_v57 = vmax.f32 %v858_v20, 0.0  ;;  %v2617_v20 = vadd.f32 %v2585_v13, %v5465_v18 }
 0x1ac   : > { %4332 = vmatmul.mubr.msk.f32.gmra.mrb[16].mxu0 %vm1013_vm2, %v888_v6  ;;  %4739 = vmatprep.subr.bf16.mxu1 %v7024_v32  ;;  %v7033_v6 = vld [vmem:[#allocation14_spill] sm:$0xff]  ;;  %v861_v26 = vadd.f32 %v829_v0, %v5810_v12  ;;  %v2618_v31 = vadd.f32 %v2586_v61, %v5469_v8  ;;  %v2588_v0 = vmul.f32 %v7021_v55, %v5720_v29 }
 0x1ad   : > { %4334 = vmatprep.mubr.msk.f32.mxu0 %vm1013_vm2, %v889_v35  ;;  %v860_v33 = vadd.f32 %v828_v52, %v7033_v6  ;;  %v7035_v35 = vld [vmem:[#allocation3_spill] sm:$0xff]  ;;  %v2587_v52 = vmul.f32 %v7021_v55, %v5704_v22 }
 0x1ae   : > { %4512 = vmatmul.mubr.msk.f32.gmra.mrb[14].mxu1 %vm1013_vm2, %v2645_v21  ;;  %v831_v14 = vmul.f32 %v7010_v54, %v7035_v35  ;;  %v2648_v21 = vmax.f32 %v2616_v59, 0.0  ;;  %v893_v13 = vmax.f32 %v861_v26, 0.0  ;;  %v2649_v59 = vmax.f32 %v2617_v20, 0.0 }
 0x1af   : > { %4514 = vmatprep.mubr.msk.f32.mxu1 %vm1013_vm2, %v2646_v19  ;;  %4741 = vmatpush3.bf16.msra.mxu1 %v7024_v32  ;;  %v892_v19 = vmax.f32 %v860_v33, 0.0  ;;  %v7036_v32 = vld [vmem:[#allocation42_spill] sm:$0xff]  ;;  %v2619_v61 = vadd.f32 %v2587_v52, %v6981_v42  ;;  %v2589_v33 = vmul.f32 %v7021_v55, %v5741_v15  ;;  %v2590_v26 = vmul.f32 %v7021_v55, %v5750_v1 }
 0x1b0   : > { %4335 = vmatmul.mubr.msk.f32.gmra.mrb[18].mxu0 %vm1013_vm2, %v890_v57  ;;  %v862_v17 = vadd.f32 %v830_v37, %v7036_v32  ;;  %v7037_v57 = vld [vmem:[#allocation4_spill] sm:$0xff]  ;;  %v863_v22 = vadd.f32 %v831_v14, %v5865_v27  ;;  %v2650_v37 = vmax.f32 %v2618_v31, 0.0  ;;  %v834_v20 = vmul.f32 %v7010_v54, %v5516_v34 }
 0x1b1   : > { %4337 = vmatprep.mubr.msk.f32.mxu0 %vm1013_vm2, %v891_v48  ;;  %v832_v53 = vmul.f32 %v7010_v54, %v7037_v57  ;;  %v833_v48 = vmul.f32 %v7010_v54, %v5494_v58  ;;  %v2621_v1 = vadd.f32 %v2589_v33, %v7025_v10 }
 0x1b2   : > { %4515 = vmatmul.mubr.msk.f32.gmra.mrb[16].mxu1 %vm1013_vm2, %v2647_v40  ;;  %v2620_v40 = vadd.f32 %v2588_v0, %v5500_v11  ;;  %v894_v14 = vmax.f32 %v862_v17, 0.0  ;;  %v895_v52 = vmax.f32 %v863_v22, 0.0  ;;  %v2651_v0 = vmax.f32 %v2619_v61, 0.0 }
 0x1b3   : > { %4517 = vmatprep.mubr.msk.f32.mxu1 %vm1013_vm2, %v2648_v21  ;;  %v864_v21 = vadd.f32 %v832_v53, %v5879_v39  ;;  %v2591_v17 = vmul.f32 %v7021_v55, %v7026_v51  ;;  %v2592_v22 = vmul.f32 %v7021_v55, %v7028_v46 }
 0x1b4   : > { %4338 = vmatmul.mubr.msk.f32.gmra.mrb[20].mxu0 %vm1013_vm2, %v892_v19  ;;  %v7038_v19 = vld [vmem:[#allocation20_spill] sm:$0xff]  ;;  %v2652_v53 = vmax.f32 %v2620_v40, 0.0 }
 0x1b5   : > { %4340 = vmatprep.mubr.msk.f32.mxu0 %vm1013_vm2, %v893_v13  ;;  %v865_v15 = vadd.f32 %v833_v48, %v7038_v19  ;;  %v7039_v13 = vld [vmem:[#allocation49_spill] sm:$0xff]  ;;  %v896_v48 = vmax.f32 %v864_v21, 0.0  ;;  %v2623_v46 = vadd.f32 %v2591_v17, %v7029_v63  ;;  %v2593_v21 = vmul.f32 %v7021_v55, %v7030_v16 }
 0x1b6   : > { %4518 = vmatmul.mubr.msk.f32.gmra.mrb[18].mxu1 %vm1013_vm2, %v2649_v59  ;;  %v835_v31 = vmul.f32 %v7010_v54, %v7039_v13  ;;  %v2622_v59 = vadd.f32 %v2590_v26, %v7027_v23  ;;  %v2653_v26 = vmax.f32 %v2621_v1, 0.0  ;;  %v838_v1 = vmul.f32 %v7010_v54, %v7003_v60 }
 0x1b7   : > { %4520 = vmatprep.mubr.msk.f32.mxu1 %vm1013_vm2, %v2650_v37  ;;  %v866_v37 = vadd.f32 %v834_v20, %v5378_v3  ;;  %v897_v33 = vmax.f32 %v865_v15, 0.0  ;;  %v2594_v15 = vmul.f32 %v7021_v55, %v7032_v4  ;;  %v2625_v4 = vadd.f32 %v2593_v21, %v7033_v6 }
 0x1b8   : > { %4341 = vmatmul.mubr.msk.f32.gmra.mrb[22].mxu0 %vm1013_vm2, %v894_v14  ;;  %v7040_v14 = vld [vmem:[#allocation53_spill] sm:$0xff]  ;;  %v867_v51 = vadd.f32 %v835_v31, %v7000_v2  ;;  %v2654_v20 = vmax.f32 %v2622_v59, 0.0 }
 0x1b9   : > { %4343 = vmatprep.mubr.msk.f32.mxu0 %vm1013_vm2, %v895_v52  ;;  %v836_v61 = vmul.f32 %v7010_v54, %v7040_v14  ;;  %v7041_v52 = vld [vmem:[#allocation54_spill] sm:$0xff]  ;;  %v898_v31 = vmax.f32 %v866_v37, 0.0  ;;  %v2595_v37 = vmul.f32 %v7021_v55, %v7034_v62 }
 0x1ba   : > { %4521 = vmatmul.mubr.msk.f32.gmra.mrb[20].mxu1 %vm1013_vm2, %v2651_v0  ;;  %v837_v40 = vmul.f32 %v7010_v54, %v7041_v52  ;;  %v2624_v0 = vadd.f32 %v2592_v22, %v7031_v41  ;;  %v899_v17 = vmax.f32 %v867_v51, 0.0  ;;  %v2655_v22 = vmax.f32 %v2623_v46, 0.0 }
 0x1bb   : > { %4523 = vmatprep.mubr.msk.f32.mxu1 %vm1013_vm2, %v2652_v53  ;;  %v868_v53 = vadd.f32 %v836_v61, %v7002_v7  ;;  %v2596_v51 = vmul.f32 %v7021_v55, %v7035_v35  ;;  %v840_v46 = vmul.f32 %v7010_v54, %v7007_v49  ;;  %v2627_v35 = vadd.f32 %v2595_v37, %v7036_v32 }
 0x1bc   : > { %4344 = vmatmul.mubr.msk.f32.gmra.mrb[24].mxu0 %vm1013_vm2, %v896_v48  ;;  %v7042_v48 = vld [vmem:[#allocation24_spill] sm:$0xff]  ;;  %v2656_v61 = vmax.f32 %v2624_v0, 0.0  ;;  %v7044_v0 = vld [vmem:[#allocation45_spill] sm:$0xff] }
 0x1bd   : > { %4346 = vmatprep.mubr.msk.f32.mxu0 %vm1013_vm2, %v897_v33  ;;  %v869_v16 = vadd.f32 %v837_v40, %v7042_v48  ;;  %v7043_v33 = vld [vmem:[#allocation56_spill] sm:$0xff]  ;;  %v900_v40 = vmax.f32 %v868_v53, 0.0  ;;  %v2597_v53 = vmul.f32 %v7021_v55, %v7037_v57 }
 0x1be   : > { %4524 = vmatmul.mubr.msk.f32.gmra.mrb[22].mxu1 %vm1013_vm2, %v2653_v26  ;;  %v839_v59 = vmul.f32 %v7010_v54, %v7043_v33  ;;  %v2626_v26 = vadd.f32 %v2594_v15, %v5810_v12  ;;  %v2657_v15 = vmax.f32 %v2625_v4, 0.0  ;;  %v2628_v54 = vadd.f32 %v2596_v51, %v5865_v27 }
 0x1bf   : > { %4526 = vmatprep.mubr.msk.f32.mxu1 %vm1013_vm2, %v2654_v20  ;;  %v870_v20 = vadd.f32 %v838_v1, %v7006_v25  ;;  %v901_v21 = vmax.f32 %v869_v16, 0.0  ;;  %v2598_v16 = vmul.f32 %v7021_v55, %v5494_v58  ;;  %v872_v4 = vadd.f32 %v840_v46, %v7011_v43 }
 0x1c0   : > { %4347 = vmatmul.mubr.msk.f32.gmra.mrb[26].mxu0 %vm1013_vm2, %v898_v31  ;;  %v871_v31 = vadd.f32 %v839_v59, %v7008_v56  ;;  %v2658_v1 = vmax.f32 %v2626_v26, 0.0  ;;  %v7045_v59 = vld [vmem:[#allocation43_spill] sm:$0xff]  ;;  %v1662_v26 = vmul.f32 %v7044_v0, %v7013_v36  ;;  %v2659_v51 = vmax.f32 %v2627_v35, 0.0 }
 0x1c1   : > { %4349 = vmatprep.mubr.msk.f32.mxu0 %vm1013_vm2, %v899_v17  ;;  %v1660_v17 = vmul.f32 %v7044_v0, %v7009_v30  ;;  %v2630_v46 = vadd.f32 %v2598_v16, %v7038_v19  ;;  %v1663_v35 = vmul.f32 %v7044_v0, %v5567_v5 }
 0x1c2   : > { %4527 = vmatmul.mubr.msk.f32.gmra.mrb[24].mxu1 %vm1013_vm2, %v2655_v22  ;;  %v1661_v22 = vmul.f32 %v7044_v0, %v7045_v59  ;;  %v903_v37 = vmax.f32 %v871_v31, 0.0  ;;  %v2599_v59 = vmul.f32 %v7021_v55, %v5516_v34  ;;  %v2600_v31 = vmul.f32 %v7021_v55, %v7039_v13 }
 0x1c3   : > { %4529 = vmatprep.mubr.msk.f32.mxu1 %vm1013_vm2, %v2656_v61  ;;  %v902_v61 = vmax.f32 %v870_v20, 0.0  ;;  %v2660_v20 = vmax.f32 %v2628_v54, 0.0  ;;  %v1664_v54 = vmul.f32 %v7044_v0, %v7015_v28 }
 0x1c4   : > { %4350 = vmatmul.mubr.msk.f32.gmra.mrb[28].mxu0 %vm1013_vm2, %v900_v40  ;;  %v1692_v40 = vadd.f32 %v1660_v17, %v7012_v38  ;;  %v1693_v17 = vadd.f32 %v1661_v22, %v5423_v47  ;;  %v2601_v22 = vmul.f32 %v7021_v55, %v7040_v14 }
 0x1c5   : > { %4352 = vmatprep.mubr.msk.f32.mxu0 %vm1013_vm2, %v901_v21  ;;  %v2629_v21 = vadd.f32 %v2597_v53, %v5879_v39 }
 0x1c6   : > { %4530 = vmatmul.mubr.msk.f32.gmra.mrb[26].mxu1 %vm1013_vm2, %v2657_v15  ;;  %v904_v15 = vmax.f32 %v872_v4, 0.0  ;;  %v1724_v53 = vmax.f32 %v1692_v40, 0.0  ;;  %v2662_v4 = vmax.f32 %v2630_v46, 0.0  ;;  %v2602_v40 = vmul.f32 %v7021_v55, %v7041_v52 }
 0x1c7   : > { %4532 = vmatprep.mubr.msk.f32.mxu1 %vm1013_vm2, %v2658_v1  ;;  %v1694_v1 = vadd.f32 %v1662_v26, %v5427_v45  ;;  %v2661_v16 = vmax.f32 %v2629_v21, 0.0  ;;  %v1725_v26 = vmax.f32 %v1693_v17, 0.0  ;;  %v1665_v21 = vmul.f32 %v7044_v0, %v7017_v44 }
 0x1c8   : > { %4353 = vmatmul.mubr.msk.f32.gmra.mrb[30].mxu0 %vm1013_vm2, %v902_v61  ;;  %v2631_v61 = vadd.f32 %v2599_v59, %v5378_v3  ;;  %v2633_v17 = vadd.f32 %v2601_v22, %v7002_v7  ;;  %v2634_v52 = vadd.f32 %v2602_v40, %v7042_v48  ;;  %v7053_v48 = vld [vmem:[#allocation34_spill] sm:$0xff] }
 0x1c9   : > { %4355 = vmatprep.mubr.msk.f32.mxu0 %vm1013_vm2, %v903_v37  ;;  %v2632_v37 = vadd.f32 %v2600_v31, %v7000_v2  ;;  %v1726_v59 = vmax.f32 %v1694_v1, 0.0  ;;  %v2604_v1 = vmul.f32 %v7021_v55, %v7043_v33 }
 0x1ca   : > { %4533 = vmatmul.mubr.msk.f32.gmra.mrb[28].mxu1 %vm1013_vm2, %v2659_v51  ;;  %v1695_v51 = vadd.f32 %v1663_v35, %v7016_v24  ;;  %v2663_v31 = vmax.f32 %v2631_v61, 0.0  ;;  %v2665_v40 = vmax.f32 %v2633_v17, 0.0 }
 0x1cb   : > { %4535 = vmatprep.mubr.msk.f32.mxu1 %vm1013_vm2, %v2660_v20  ;;  %v7046_v20 = vld [vmem:[#allocation30_spill] sm:$0xff]  ;;  %v2664_v35 = vmax.f32 %v2632_v37, 0.0 }
 0x1cc   : > { %4356 = vmatmul.mubr.msk.f32.gmra.mrb[32].mxu0 %vm1013_vm2, %v904_v15  ;;  %v1696_v15 = vadd.f32 %v1664_v54, %v7046_v20  ;;  %v1727_v54 = vmax.f32 %v1695_v51, 0.0  ;;  %v2605_v51 = vmul.f32 %v7021_v55, %v7007_v49 }
 0x1cd   : > { %4374 = vmatprep.mubr.msk.f32.mxu0 %vm1013_vm2, %v1724_v53  ;;  %v7047_v53 = vld [vmem:[#allocation62_spill] sm:$0xff] }
 0x1ce   : > { %4536 = vmatmul.mubr.msk.f32.gmra.mrb[30].mxu1 %vm1013_vm2, %v2661_v16  ;;  %v1666_v46 = vmul.f32 %v7044_v0, %v7047_v53  ;;  %v2603_v16 = vmul.f32 %v7021_v55, %v7003_v60  ;;  %v1728_v22 = vmax.f32 %v1696_v15, 0.0  ;;  %v7050_v60 = vld [vmem:[#allocation32_spill] sm:$0xff] }
 0x1cf   : > { %4538 = vmatprep.mubr.msk.f32.mxu1 %vm1013_vm2, %v2662_v4  ;;  %v7048_v4 = vld [vmem:[#allocation31_spill] sm:$0xff]  ;;  %v7052_v15 = vld [vmem:[#allocation48_spill] sm:$0xff] }
 0x1d0   : > { %4375 = vmatmul.mubr.msk.f32.vlgmr.msra.gmra.mrb[2].mxu0 %vm1013_vm2, %v1725_v26  ;;  %v1697_v2 = vadd.f32 %v1665_v21, %v7048_v4  ;;  %v7049_v26 = vld [vmem:[#allocation63_spill] sm:$0xff]  ;;  %v1698_v7 = vadd.f32 %v1666_v46, %v7050_v60  ;;  %v2635_v33 = vadd.f32 %v2603_v16, %v7006_v25  ;;  %v2666_v21 = vmax.f32 %v2634_v52, 0.0 }
 0x1d1   : > { %4377 = vmatprep.mubr.msk.f32.mxu0 %vm1013_vm2, %v1726_v59  ;;  %v1667_v61 = vmul.f32 %v7044_v0, %v7049_v26  ;;  %v7051_v59 = vld [vmem:[#allocation64_spill] sm:$0xff] }
 0x1d2   : > { %4539 = vmatmul.mubr.msk.f32.gmra.mrb[0].mxu1 %vm1013_vm2, %v2663_v31  ;;  %v1668_v37 = vmul.f32 %v7044_v0, %v7051_v59  ;;  %v2636_v31 = vadd.f32 %v2604_v1, %v7008_v56  ;;  %v1729_v46 = vmax.f32 %v1697_v2, 0.0  ;;  %v1730_v16 = vmax.f32 %v1698_v7, 0.0  ;;  %v7057_v56 = vld [vmem:[#allocation21_spill] sm:$0xff] }
 0x1d3   : > { %4541 = vmatprep.mubr.msk.f32.mxu1 %vm1013_vm2, %v2664_v35  ;;  %v3031_v35 = vmul.f32 %v7052_v15, %v7009_v30  ;;  %v1699_v14 = vadd.f32 %v1667_v61, %v7053_v48  ;;  %v2667_v1 = vmax.f32 %v2635_v33, 0.0  ;;  %v2637_v30 = vadd.f32 %v2605_v51, %v7011_v43 }
 0x1d4   : > { %4378 = vmatmul.mubr.msk.f32.gmra.mrb[4].mxu0 %vm1013_vm2, %v1727_v54  ;;  %v7054_v54 = vld [vmem:[#allocation11_spill] sm:$0xff]  ;;  %v1700_v55 = vadd.f32 %v1668_v37, %v6962_v50  ;;  %v2668_v2 = vmax.f32 %v2636_v31, 0.0  ;;  %v7056_v37 = vld [vmem:[#allocation38_spill] sm:$0xff]  ;;  %v1671_v49 = vmul.f32 %v7044_v0, %v7057_v56 }
 0x1d5   : > { %4380 = vmatprep.mubr.msk.f32.mxu0 %vm1013_vm2, %v1728_v22  ;;  %v1669_v17 = vmul.f32 %v7044_v0, %v7054_v54  ;;  %v7055_v22 = vld [vmem:[#allocation33_spill] sm:$0xff]  ;;  %v3063_v61 = vadd.f32 %v3031_v35, %v7012_v38  ;;  %v1731_v7 = vmax.f32 %v1699_v14, 0.0  ;;  %v7059_v38 = vld [vmem:[#allocation52_spill] sm:$0xff]  ;;  %v3034_v14 = vmul.f32 %v7052_v15, %v5567_v5 }
 0x1d6   : > { %4542 = vmatmul.mubr.msk.f32.gmra.mrb[2].mxu1 %vm1013_vm2, %v2665_v40  ;;  %v1670_v52 = vmul.f32 %v7044_v0, %v7055_v22  ;;  %v3033_v40 = vmul.f32 %v7052_v15, %v7013_v36  ;;  %v1732_v33 = vmax.f32 %v1700_v55, 0.0  ;;  %v3064_v35 = vadd.f32 %v7059_v38, %v5423_v47  ;;  %v7060_v47 = vld [vmem:[#allocation13_spill] sm:$0xff] }
 0x1d7   : > { %4544 = vmatprep.mubr.msk.f32.mxu1 %vm1013_vm2, %v2666_v21  ;;  %v1701_v21 = vadd.f32 %v1669_v17, %v7056_v37  ;;  %v2669_v36 = vmax.f32 %v2637_v30, 0.0  ;;  %v3095_v17 = vmax.f32 %v3063_v61, 0.0  ;;  %v3035_v55 = vmul.f32 %v7052_v15, %v7015_v28 }
 0x1d8   : > { %4381 = vmatmul.mubr.msk.f32.gmra.mrb[6].mxu0 %vm1013_vm2, %v1729_v46  ;;  %v1702_v51 = vadd.f32 %v1670_v52, %v6972_v9  ;;  %v7058_v46 = vld [vmem:[#allocation35_spill] sm:$0xff]  ;;  %v1674_v61 = vmul.f32 %v7044_v0, %v5720_v29  ;;  %v3066_v28 = vadd.f32 %v3034_v14, %v7016_v24  ;;  %v3038_v14 = vmul.f32 %v7052_v15, %v7049_v26 }
 0x1d9   : > { %4383 = vmatprep.mubr.msk.f32.mxu0 %vm1013_vm2, %v1730_v16  ;;  %v1672_v31 = vmul.f32 %v7044_v0, %v7058_v46  ;;  %v3065_v16 = vadd.f32 %v3033_v40, %v5427_v45  ;;  %v1733_v52 = vmax.f32 %v1701_v21, 0.0  ;;  %v3096_v45 = vmax.f32 %v3064_v35, 0.0  ;;  %v7062_v35 = vld [vmem:[#allocation18_spill] sm:$0xff] }
 0x1da   : > { %4545 = vmatmul.mubr.msk.f32.gmra.mrb[4].mxu1 %vm1013_vm2, %v2667_v1  ;;  %v1703_v1 = vadd.f32 %v1671_v49, %v5465_v18  ;;  %v1734_v30 = vmax.f32 %v1702_v51, 0.0  ;;  %v3036_v40 = vmul.f32 %v7052_v15, %v7017_v44  ;;  %v3037_v21 = vmul.f32 %v7052_v15, %v7047_v53 }
 0x1db   : > { %4547 = vmatprep.mubr.msk.f32.mxu1 %vm1013_vm2, %v2668_v2  ;;  %v1673_v2 = vmul.f32 %v7044_v0, %v7060_v47  ;;  %v1704_v5 = vadd.f32 %v1672_v31, %v5469_v8  ;;  %v3097_v49 = vmax.f32 %v3065_v16, 0.0  ;;  %v7061_v31 = vld [vmem:[#allocation36_spill] sm:$0xff]  ;;  %v1706_v44 = vadd.f32 %v1674_v61, %v5500_v11 }
 0x1dc   : > { %4384 = vmatmul.mubr.msk.f32.gmra.mrb[8].mxu0 %vm1013_vm2, %v1731_v7  ;;  %v3067_v7 = vadd.f32 %v3035_v55, %v7046_v20  ;;  %v1675_v38 = vmul.f32 %v7044_v0, %v7061_v31  ;;  %v3098_v20 = vmax.f32 %v3066_v28, 0.0  ;;  %v3068_v53 = vadd.f32 %v3036_v40, %v7048_v4 }
 0x1dd   : > { %4386 = vmatprep.mubr.msk.f32.mxu0 %vm1013_vm2, %v1732_v33  ;;  %v1735_v33 = vmax.f32 %v1703_v1, 0.0  ;;  %v1705_v51 = vadd.f32 %v1673_v2, %v6981_v42  ;;  %v1736_v24 = vmax.f32 %v1704_v5, 0.0  ;;  %v3069_v16 = vadd.f32 %v3037_v21, %v7050_v60  ;;  %v7063_v2 = vld [vmem:[#allocation39_spill] sm:$0xff] }
 0x1de   : > { %4548 = vmatmul.mubr.msk.f32.gmra.mrb[6].mxu1 %vm1013_vm2, %v2669_v36  ;;  %v1676_v36 = vmul.f32 %v7044_v0, %v7062_v35  ;;  %v3039_v55 = vmul.f32 %v7052_v15, %v7051_v59  ;;  %v1707_v1 = vadd.f32 %v1675_v38, %v7025_v10  ;;  %v1738_v4 = vmax.f32 %v1706_v44, 0.0  ;;  %v7064_v5 = vld [vmem:[#allocation15_spill] sm:$0xff]  ;;  %v7066_v38 = vld [vmem:[#allocation16_spill] sm:$0xff] }
 0x1df   : > { %4566 = vmatprep.mubr.msk.f32.mxu1 %vm1013_vm2, %v3095_v17  ;;  %v3099_v17 = vmax.f32 %v3067_v7, 0.0  ;;  %v1678_v61 = vmul.f32 %v7044_v0, %v7064_v5  ;;  %v3100_v60 = vmax.f32 %v3068_v53, 0.0  ;;  %v3070_v59 = vadd.f32 %v3038_v14, %v7053_v48 }
 0x1e0   : > { %4387 = vmatmul.mubr.msk.f32.gmra.mrb[10].mxu0 %vm1013_vm2, %v1733_v52  ;;  %v1737_v52 = vmax.f32 %v1705_v51, 0.0  ;;  %v1708_v26 = vadd.f32 %v1676_v36, %v7027_v23  ;;  %v3101_v28 = vmax.f32 %v3069_v16, 0.0  ;;  %v3071_v40 = vadd.f32 %v3039_v55, %v6962_v50  ;;  %v7067_v55 = vld [vmem:[#allocation3_spill] sm:$0xff] }
 0x1e1   : > { %4389 = vmatprep.mubr.msk.f32.mxu0 %vm1013_vm2, %v1734_v30  ;;  %v1677_v30 = vmul.f32 %v7044_v0, %v7063_v2  ;;  %v1739_v7 = vmax.f32 %v1707_v1, 0.0  ;;  %v3102_v50 = vmax.f32 %v3070_v59, 0.0  ;;  %v3042_v44 = vmul.f32 %v7052_v15, %v7057_v56 }
 0x1e2   : > { %4567 = vmatmul.mubr.msk.f32.vlgmr.msra.gmra.mrb[8].mxu1 %vm1013_vm2, %v3096_v45  ;;  %v3040_v45 = vmul.f32 %v7052_v15, %v7054_v54  ;;  %v1740_v48 = vmax.f32 %v1708_v26, 0.0  ;;  %v1710_v54 = vadd.f32 %v1678_v61, %v7031_v41  ;;  %v3103_v36 = vmax.f32 %v3071_v40, 0.0 }
 0x1e3   : > { %4569 = vmatprep.mubr.msk.f32.mxu1 %vm1013_vm2, %v3097_v49  ;;  %v3041_v49 = vmul.f32 %v7052_v15, %v7055_v22  ;;  %v1709_v21 = vadd.f32 %v1677_v30, %v7029_v63  ;;  %v3043_v53 = vmul.f32 %v7052_v15, %v7058_v46  ;;  %v1681_v16 = vmul.f32 %v7044_v0, %v7034_v62 }
 0x1e4   : > { %4390 = vmatmul.mubr.msk.f32.gmra.mrb[12].mxu0 %vm1013_vm2, %v1735_v33  ;;  %v7065_v33 = vld [vmem:[#allocation40_spill] sm:$0xff]  ;;  %v3072_v22 = vadd.f32 %v3040_v45, %v7056_v37  ;;  %v1742_v37 = vmax.f32 %v1710_v54, 0.0  ;;  %v3074_v46 = vadd.f32 %v3042_v44, %v5465_v18  ;;  %v3044_v1 = vmul.f32 %v7052_v15, %v7060_v47 }
 0x1e5   : > { %4392 = vmatprep.mubr.msk.f32.mxu0 %vm1013_vm2, %v1736_v24  ;;  %v1679_v51 = vmul.f32 %v7044_v0, %v7065_v33  ;;  %v1680_v24 = vmul.f32 %v7044_v0, %v7066_v38  ;;  %v1741_v14 = vmax.f32 %v1709_v21, 0.0  ;;  %v3045_v26 = vmul.f32 %v7052_v15, %v5720_v29 }
 0x1e6   : > { %4570 = vmatmul.mubr.msk.f32.gmra.mrb[10].mxu1 %vm1013_vm2, %v3098_v20  ;;  %v3073_v20 = vadd.f32 %v3041_v49, %v6972_v9  ;;  %v3104_v9 = vmax.f32 %v3072_v22, 0.0  ;;  %v1683_v59 = vmul.f32 %v7044_v0, %v7037_v57  ;;  %v3106_v45 = vmax.f32 %v3074_v46, 0.0 }
 0x1e7   : > { %4572 = vmatprep.mubr.msk.f32.mxu1 %vm1013_vm2, %v3099_v17  ;;  %v1711_v17 = vadd.f32 %v1679_v51, %v7033_v6  ;;  %v1712_v56 = vadd.f32 %v1680_v24, %v5810_v12  ;;  %v3046_v29 = vmul.f32 %v7052_v15, %v7061_v31  ;;  %v3077_v40 = vadd.f32 %v3045_v26, %v5500_v11  ;;  %v7073_v26 = vld [vmem:[#allocation24_spill] sm:$0xff] }
 0x1e8   : > { %4393 = vmatmul.mubr.msk.f32.gmra.mrb[14].mxu0 %vm1013_vm2, %v1737_v52  ;;  %v1682_v52 = vmul.f32 %v7044_v0, %v7067_v55  ;;  %v3105_v30 = vmax.f32 %v3073_v20, 0.0  ;;  %v3047_v0 = vmul.f32 %v7052_v15, %v7062_v35  ;;  %v3048_v51 = vmul.f32 %v7052_v15, %v7063_v2 }
 0x1e9   : > { %4395 = vmatprep.mubr.msk.f32.mxu0 %vm1013_vm2, %v1738_v4  ;;  %v3075_v4 = vadd.f32 %v3043_v53, %v5469_v8  ;;  %v1743_v61 = vmax.f32 %v1711_v17, 0.0  ;;  %v1744_v18 = vmax.f32 %v1712_v56, 0.0  ;;  %v3076_v8 = vadd.f32 %v3044_v1, %v6981_v42  ;;  %v7068_v56 = vld [vmem:[#allocation53_spill] sm:$0xff] }
 0x1ea   : > { %4573 = vmatmul.mubr.msk.f32.gmra.mrb[12].mxu1 %vm1013_vm2, %v3100_v60  ;;  %v1713_v60 = vadd.f32 %v1681_v16, %v7036_v32  ;;  %v1714_v47 = vadd.f32 %v1682_v52, %v5865_v27  ;;  %v3078_v31 = vadd.f32 %v3046_v29, %v7025_v10  ;;  %v3109_v11 = vmax.f32 %v3077_v40, 0.0  ;;  %v7069_v52 = vld [vmem:[#allocation22_spill] sm:$0xff] }
 0x1eb   : > { %4575 = vmatprep.mubr.msk.f32.mxu1 %vm1013_vm2, %v3101_v28  ;;  %v3107_v28 = vmax.f32 %v3075_v4, 0.0  ;;  %v3108_v42 = vmax.f32 %v3076_v8, 0.0  ;;  %v3079_v35 = vadd.f32 %v3047_v0, %v7027_v23  ;;  %v3080_v10 = vadd.f32 %v3048_v51, %v7029_v63 }
 0x1ec   : > { %4396 = vmatmul.mubr.msk.f32.gmra.mrb[16].mxu0 %vm1013_vm2, %v1739_v7  ;;  %v1745_v49 = vmax.f32 %v1713_v60, 0.0  ;;  %v1715_v7 = vadd.f32 %v1683_v59, %v5879_v39  ;;  %v1746_v21 = vmax.f32 %v1714_v47, 0.0  ;;  %v3110_v24 = vmax.f32 %v3078_v31, 0.0  ;;  %v7074_v60 = vld [vmem:[#allocation56_spill] sm:$0xff] }
 0x1ed   : > { %4398 = vmatprep.mubr.msk.f32.mxu0 %vm1013_vm2, %v1740_v48  ;;  %v3049_v48 = vmul.f32 %v7052_v15, %v7064_v5  ;;  %v3050_v2 = vmul.f32 %v7052_v15, %v7065_v33  ;;  %v3051_v23 = vmul.f32 %v7052_v15, %v7066_v38  ;;  %v3112_v5 = vmax.f32 %v3080_v10, 0.0 }
 0x1ee   : > { %4576 = vmatmul.mubr.msk.f32.gmra.mrb[14].mxu1 %vm1013_vm2, %v3102_v50  ;;  %v1747_v54 = vmax.f32 %v1715_v7, 0.0  ;;  %v3111_v50 = vmax.f32 %v3079_v35, 0.0  ;;  %v3053_v33 = vmul.f32 %v7052_v15, %v7067_v55  ;;  %v3054_v53 = vmul.f32 %v7052_v15, %v7037_v57 }
 0x1ef   : > { %4578 = vmatprep.mubr.msk.f32.mxu1 %vm1013_vm2, %v3103_v36  ;;  %v3081_v22 = vadd.f32 %v3049_v48, %v7031_v41  ;;  %v3082_v44 = vadd.f32 %v3050_v2, %v7033_v6  ;;  %v3052_v36 = vmul.f32 %v7052_v15, %v7034_v62  ;;  %v3083_v20 = vadd.f32 %v3051_v23, %v5810_v12 }
 0x1f0   : > { %4399 = vmatmul.mubr.msk.f32.gmra.mrb[18].mxu0 %vm1013_vm2, %v1741_v14  ;;  %v3085_v14 = vadd.f32 %v3053_v33, %v5865_v27  ;;  %v3055_v62 = vmul.f32 %v7052_v15, %v5494_v58  ;;  %v3086_v17 = vadd.f32 %v3054_v53, %v5879_v39  ;;  %v3056_v16 = vmul.f32 %v7052_v15, %v5516_v34  ;;  %v7070_v34 = vld [vmem:[#allocation54_spill] sm:$0xff] }
 0x1f1   : > { %4401 = vmatprep.mubr.msk.f32.mxu0 %vm1013_vm2, %v1742_v37  ;;  %v3113_v63 = vmax.f32 %v3081_v22, 0.0  ;;  %v3114_v41 = vmax.f32 %v3082_v44, 0.0  ;;  %v3084_v38 = vadd.f32 %v3052_v36, %v7036_v32  ;;  %v3115_v6 = vmax.f32 %v3083_v20, 0.0 }
 0x1f2   : > { %4579 = vmatmul.mubr.msk.f32.gmra.mrb[16].mxu1 %vm1013_vm2, %v3104_v9  ;;  %v3117_v32 = vmax.f32 %v3085_v14, 0.0  ;;  %v3087_v37 = vadd.f32 %v3055_v62, %v7038_v19  ;;  %v3057_v57 = vmul.f32 %v7052_v15, %v7039_v13  ;;  %v3118_v58 = vmax.f32 %v3086_v17, 0.0  ;;  %v7071_v13 = vld [vmem:[#allocation23_spill] sm:$0xff] }
 0x1f3   : > { %4581 = vmatprep.mubr.msk.f32.mxu1 %vm1013_vm2, %v3105_v30  ;;  %v3116_v12 = vmax.f32 %v3084_v38, 0.0  ;;  %v3088_v27 = vadd.f32 %v3056_v16, %v5378_v3  ;;  %v3058_v55 = vmul.f32 %v7052_v15, %v7068_v56  ;;  %v3059_v46 = vmul.f32 %v7052_v15, %v7070_v34  ;;  %v7072_v30 = vld [vmem:[#allocation55_spill] sm:$0xff] }
 0x1f4   : > { %4402 = vmatmul.mubr.msk.f32.gmra.mrb[20].mxu0 %vm1013_vm2, %v1743_v61  ;;  %v3119_v39 = vmax.f32 %v3087_v37, 0.0  ;;  %v3089_v9 = vadd.f32 %v3057_v57, %v7069_v52  ;;  %v3060_v4 = vmul.f32 %v7052_v15, %v7072_v30  ;;  %v3061_v59 = vmul.f32 %v7052_v15, %v7074_v60 }
 0x1f5   : > { %4404 = vmatprep.mubr.msk.f32.mxu0 %vm1013_vm2, %v1744_v18  ;;  %v3120_v19 = vmax.f32 %v3088_v27, 0.0  ;;  %v3090_v1 = vadd.f32 %v3058_v55, %v7071_v13  ;;  %v3091_v61 = vadd.f32 %v3059_v46, %v7073_v26 }
 0x1f6   : > { %4582 = vmatmul.mubr.msk.f32.gmra.mrb[18].mxu1 %vm1013_vm2, %v3106_v45  ;;  %v3121_v3 = vmax.f32 %v3089_v9, 0.0  ;;  %v3092_v47 = vadd.f32 %v3060_v4, %v7006_v25  ;;  %v7075_v45 = vld [vmem:[#allocation57_spill] sm:$0xff]  ;;  %v7077_v25 = vmov 0.0  }
 0x1f7   : > { %4584 = vmatprep.mubr.msk.f32.mxu1 %vm1013_vm2, %v3107_v28  ;;  %v3122_v18 = vmax.f32 %v3090_v1, 0.0  ;;  %v3062_v8 = vmul.f32 %v7052_v15, %v7075_v45  ;;  %v3123_v29 = vmax.f32 %v3091_v61, 0.0  ;;  %v7076_v28 = vld [vmem:[#allocation26_spill] sm:$0xff]  ;;  %227 = vst.msk [vmem:[#allocation2 + $0x8] sm:$0xff] %vm225_vm3, %v7077_v25  ;;  %226 = vst.msk [vmem:[#allocation2] sm:$0xff] %vm225_vm3, %v7077_v25 }
 0x1f8   : > { %4405 = vmatmul.mubr.msk.f32.gmra.mrb[22].mxu0 %vm1013_vm2, %v1745_v49  ;;  %v3093_v40 = vadd.f32 %v3061_v59, %v7076_v28  ;;  %v3124_v0 = vmax.f32 %v3092_v47, 0.0  ;;  %228 = vst.msk [vmem:[#allocation2 + $0x10] sm:$0xff] %vm225_vm3, %v7077_v25  ;;  %229 = vst.msk [vmem:[#allocation2 + $0x18] sm:$0xff] %vm225_vm3, %v7077_v25 }
 0x1f9   : > { %4407 = vmatprep.mubr.msk.f32.mxu0 %vm1013_vm2, %v1746_v21  ;;  %v3094_v49 = vadd.f32 %v3062_v8, %v7011_v43  ;;  %230 = vst.msk [vmem:[#allocation2 + $0x20] sm:$0xff] %vm225_vm3, %v7077_v25  ;;  %231 = vst.msk [vmem:[#allocation2 + $0x28] sm:$0xff] %vm225_vm3, %v7077_v25 }
 0x1fa   : > { %4585 = vmatmul.mubr.msk.f32.gmra.mrb[20].mxu1 %vm1013_vm2, %v3108_v42  ;;  %v3125_v7 = vmax.f32 %v3093_v40, 0.0  ;;  %232 = vst.msk [vmem:[#allocation2 + $0x30] sm:$0xff] %vm225_vm3, %v7077_v25  ;;  %233 = vst.msk [vmem:[#allocation2 + $0x38] sm:$0xff] %vm225_vm3, %v7077_v25 }
 0x1fb   : > { %4587 = vmatprep.mubr.msk.f32.mxu1 %vm1013_vm2, %v3109_v11  ;;  %v3126_v21 = vmax.f32 %v3094_v49, 0.0  ;;  %234 = vst.msk [vmem:[#allocation2 + $0x40] sm:$0xff] %vm225_vm3, %v7077_v25  ;;  %235 = vst.msk [vmem:[#allocation2 + $0x48] sm:$0xff] %vm225_vm3, %v7077_v25 }
 0x1fc   : > { %4408 = vmatmul.mubr.msk.f32.gmra.mrb[24].mxu0 %vm1013_vm2, %v1747_v54  ;;  %236 = vst.msk [vmem:[#allocation2 + $0x50] sm:$0xff] %vm225_vm3, %v7077_v25  ;;  %237 = vst.msk [vmem:[#allocation2 + $0x58] sm:$0xff] %vm225_vm3, %v7077_v25 }
 0x1fd   : > { %238 = vst.msk [vmem:[#allocation2 + $0x60] sm:$0xff] %vm225_vm3, %v7077_v25  ;;  %239 = vst.msk [vmem:[#allocation2 + $0x68] sm:$0xff] %vm225_vm3, %v7077_v25 }
 0x1fe   : > { %4588 = vmatmul.mubr.msk.f32.gmra.mrb[22].mxu1 %vm1013_vm2, %v3110_v24  ;;  %240 = vst.msk [vmem:[#allocation2 + $0x70] sm:$0xff] %vm225_vm3, %v7077_v25  ;;  %241 = vst.msk [vmem:[#allocation2 + $0x78] sm:$0xff] %vm225_vm3, %v7077_v25  ;;  %v3485_v20 = vld [vmem:[#allocation2 + $0x8] sm:$0xff]  ;;  %v3484_v38 = vld [vmem:[#allocation2] sm:$0xff] }
 0x1ff   : > { %4590 = vmatprep.mubr.msk.f32.mxu1 %vm1013_vm2, %v3111_v50  ;;  %242 = vst.msk [vmem:[#allocation2 + $0x80] sm:$0xff] %vm225_vm3, %v7077_v25  ;;  %243 = vst.msk [vmem:[#allocation2 + $0x88] sm:$0xff] %vm225_vm3, %v7077_v25  ;;  %v3487_v16 = vld [vmem:[#allocation2 + $0x18] sm:$0xff]  ;;  %v3486_v57 = vld [vmem:[#allocation2 + $0x10] sm:$0xff] }
 0x200   : > { %244 = vst.msk [vmem:[#allocation2 + $0x90] sm:$0xff] %vm225_vm3, %v7077_v25  ;;  %245 = vst.msk [vmem:[#allocation2 + $0x98] sm:$0xff] %vm225_vm3, %v7077_v25  ;;  %v3489_v9 = vld [vmem:[#allocation2 + $0x28] sm:$0xff] }
 0x201   : > { %246 = vst.msk [vmem:[#allocation2 + $0xa0] sm:$0xff] %vm225_vm3, %v7077_v25  ;;  %247 = vst.msk [vmem:[#allocation2 + $0xa8] sm:$0xff] %vm225_vm3, %v7077_v25  ;;  %v3491_v60 = vld [vmem:[#allocation2 + $0x38] sm:$0xff]  ;;  %v3490_v8 = vld [vmem:[#allocation2 + $0x30] sm:$0xff] }
 0x202   : > { %4591 = vmatmul.mubr.msk.f32.gmra.mrb[24].mxu1 %vm1013_vm2, %v3112_v5  ;;  %248 = vst.msk [vmem:[#allocation2 + $0xb0] sm:$0xff] %vm225_vm3, %v7077_v25  ;;  %249 = vst.msk [vmem:[#allocation2 + $0xb8] sm:$0xff] %vm225_vm3, %v7077_v25 }
 0x203   : > { %4593 = vmatprep.mubr.msk.f32.mxu1 %vm1013_vm2, %v3113_v63  ;;  %250 = vst.msk [vmem:[#allocation2 + $0xc0] sm:$0xff] %vm225_vm3, %v7077_v25  ;;  %251 = vst.msk [vmem:[#allocation2 + $0xc8] sm:$0xff] %vm225_vm3, %v7077_v25 }
 0x204   : > { %252 = vst.msk [vmem:[#allocation2 + $0xd0] sm:$0xff] %vm225_vm3, %v7077_v25  ;;  %253 = vst.msk [vmem:[#allocation2 + $0xd8] sm:$0xff] %vm225_vm3, %v7077_v25 }
 0x205   : > { %254 = vst.msk [vmem:[#allocation2 + $0xe0] sm:$0xff] %vm225_vm3, %v7077_v25  ;;  %255 = vst.msk [vmem:[#allocation2 + $0xe8] sm:$0xff] %vm225_vm3, %v7077_v25 }
 0x206   : > { %4594 = vmatmul.mubr.msk.f32.gmra.mrb[26].mxu1 %vm1013_vm2, %v3114_v41  ;;  %256 = vst.msk [vmem:[#allocation2 + $0xf0] sm:$0xff] %vm225_vm3, %v7077_v25  ;;  %257 = vst.msk [vmem:[#allocation2 + $0xf8] sm:$0xff] %vm225_vm3, %v7077_v25 }
 0x207   : > { %4596 = vmatprep.mubr.msk.f32.mxu1 %vm1013_vm2, %v3115_v6 }
 0x20a   : > { %4597 = vmatmul.mubr.msk.f32.gmra.mrb[28].mxu1 %vm1013_vm2, %v3116_v12 }
 0x20b   : > { %4599 = vmatprep.mubr.msk.f32.mxu1 %vm1013_vm2, %v3117_v32 }
 0x20e   : > { %4600 = vmatmul.mubr.msk.f32.gmra.mrb[30].mxu1 %vm1013_vm2, %v3118_v58 }
 0x20f   : > { %4602 = vmatprep.mubr.msk.f32.mxu1 %vm1013_vm2, %v3119_v39 }
 0x212   : > { %4603 = vmatmul.mubr.msk.f32.gmra.mrb[0].mxu1 %vm1013_vm2, %v3120_v19  ;;  %v3488_v19 = vld [vmem:[#allocation2 + $0x20] sm:$0xff] }
 0x213   : > { %4605 = vmatprep.mubr.msk.f32.mxu1 %vm1013_vm2, %v3121_v3 }
 0x216   : > { %4606 = vmatmul.mubr.msk.f32.gmra.mrb[2].mxu1 %vm1013_vm2, %v3122_v18 }
 0x217   : > { %4608 = vmatprep.mubr.msk.f32.mxu1 %vm1013_vm2, %v3123_v29 }
 0x21a   : > { %4609 = vmatmul.mubr.msk.f32.gmra.mrb[4].mxu1 %vm1013_vm2, %v3124_v0 }
 0x21b   : > { %4611 = vmatprep.mubr.msk.f32.mxu1 %vm1013_vm2, %v3125_v7 }
 0x21e   : > { %4612 = vmatmul.mubr.msk.f32.gmra.mrb[6].mxu1 %vm1013_vm2, %v3126_v21 }
 0x293   : > { %v6542_v43 = vpop.f32.mrb[26].mxu0 }
 0x294   : > { %v6544_v15 = vpop.f32.mrb[27].mxu0 }
 0x297   : > { %v6546_v42 = vpop.f32.mrb[28].mxu0 }
 0x298   : > { %v6548_v31 = vpop.f32.mrb[29].mxu0 }
 0x29b   : > { %v6550_v51 = vpop.f32.mrb[30].mxu0 }
 0x29c   : > { %v6552_v11 = vpop.f32.mrb[31].mxu0 }
 0x29f   : > { %v6554_v35 = vpop.f32.mrb[32].mxu0 }
 0x2a0   : > { %v6556_v48 = vpop.f32.mrb[33].mxu0 }
 0x2a3   : > { %v4376_v54 = vpop.f32.mrb[2].mxu0 }
 0x2a4   : > { %v1922_v24 = vpop.f32.mrb[3].mxu0 }
 0x2a7   : > { %v4379_v10 = vpop.f32.mrb[4].mxu0 }
 0x2a8   : > { %v1932_v2 = vpop.f32.mrb[5].mxu0 }
 0x2ab   : > { %v4382_v50 = vpop.f32.mrb[6].mxu0 }
 0x2ac   : > { %v1942_v22 = vpop.f32.mrb[7].mxu0 }
 0x2af   : > { %v4385_v23 = vpop.f32.mrb[8].mxu0 }
 0x2b0   : > { %v1952_v5 = vpop.f32.mrb[9].mxu0 }
 0x2b3   : > { %v4388_v44 = vpop.f32.mrb[10].mxu0 }
 0x2b4   : > { %v6558_v36 = vpop.f32.mrb[11].mxu0 }
 0x2b5   : > { %v4568_v63 = vpop.f32.mrb[8].mxu1 }
 0x2b6   : > { %v4750_v33 = vadd.f32 %v4568_v63, %v4376_v54  ;;  %v3293_v41 = vpop.f32.mrb[9].mxu1  ;;  %v3493_v54 = vld [vmem:[#allocation2 + $0x48] sm:$0xff] }
 0x2b7   : > { %v4751_v53 = vadd.f32 %v3293_v41, %v1922_v24  ;;  %v6560_v6 = vpop.f32.mrb[12].mxu0 }
 0x2b8   : > { %v3517_v14 = vadd.f32 %v4750_v33, %v3485_v20  ;;  %v6562_v62 = vpop.f32.mrb[13].mxu0 }
 0x2b9   : > { %v3516_v12 = vadd.f32 %v4751_v53, %v3484_v38  ;;  %v4571_v17 = vpop.f32.mrb[10].mxu1  ;;  %v3495_v53 = vld [vmem:[#allocation2 + $0x58] sm:$0xff] }
 0x2ba   : > { %3550 = vst.msk [vmem:[#allocation2 + $0x8] sm:$0xff] %vm225_vm3, %v3517_v14  ;;  %v4752_v32 = vadd.f32 %v4571_v17, %v4379_v10  ;;  %v3303_v37 = vpop.f32.mrb[11].mxu1 }
 0x2bb   : > { %3549 = vst.msk [vmem:[#allocation2] sm:$0xff] %vm225_vm3, %v3516_v12  ;;  %v4753_v58 = vadd.f32 %v3303_v37, %v1932_v2  ;;  %v6566_v27 = vpop.f32.mrb[14].mxu0 }
 0x2bc   : > { %v3519_v56 = vadd.f32 %v4752_v32, %v3487_v16  ;;  %v6568_v55 = vpop.f32.mrb[15].mxu0  ;;  %v3494_v16 = vld [vmem:[#allocation2 + $0x50] sm:$0xff] }
 0x2bd   : > { %v3518_v39 = vadd.f32 %v4753_v58, %v3486_v57  ;;  %v4574_v52 = vpop.f32.mrb[12].mxu1 }
 0x2be   : > { %3552 = vst.msk [vmem:[#allocation2 + $0x18] sm:$0xff] %vm225_vm3, %v3519_v56  ;;  %v4754_v34 = vadd.f32 %v4574_v52, %v4382_v50  ;;  %v3313_v46 = vpop.f32.mrb[13].mxu1 }
 0x2bf   : > { %3551 = vst.msk [vmem:[#allocation2 + $0x10] sm:$0xff] %vm225_vm3, %v3518_v39  ;;  %v4755_v13 = vadd.f32 %v3313_v46, %v1942_v22  ;;  %v6572_v1 = vpop.f32.mrb[16].mxu0  ;;  %v3492_v22 = vld [vmem:[#allocation2 + $0x40] sm:$0xff] }
 0x2c0   : > { %v3521_v30 = vadd.f32 %v4754_v34, %v3489_v9  ;;  %v6574_v4 = vpop.f32.mrb[17].mxu0  ;;  %v3497_v9 = vld [vmem:[#allocation2 + $0x68] sm:$0xff] }
 0x2c1   : > { %v3585_v3 = vld [vmem:[#allocation2 + $0x8] sm:$0xff]  ;;  %v3520_v26 = vadd.f32 %v4755_v13, %v3488_v19  ;;  %v4577_v61 = vpop.f32.mrb[14].mxu1  ;;  %v3496_v13 = vld [vmem:[#allocation2 + $0x60] sm:$0xff] }
 0x2c2   : > { %v3617_v59 = vmul.f32 0.015625, %v3585_v3  ;;  %v3584_v18 = vld [vmem:[#allocation2] sm:$0xff]  ;;  %3554 = vst.msk [vmem:[#allocation2 + $0x28] sm:$0xff] %vm225_vm3, %v3521_v30  ;;  %v4756_v47 = vadd.f32 %v4577_v61, %v4385_v23  ;;  %v3323_v45 = vpop.f32.mrb[15].mxu1 }
 0x2c3   : > { %v3616_v29 = vmul.f32 0.015625, %v3584_v18  ;;  %3553 = vst.msk [vmem:[#allocation2 + $0x20] sm:$0xff] %vm225_vm3, %v3520_v26  ;;  %v4757_v28 = vadd.f32 %v3323_v45, %v1952_v5  ;;  %v6585_v40 = vpop.f32.mrb[18].mxu0 }
 0x2c4   : > { %3649 = vst.msk [vmem:[%s6581_s6 + $0x8] sm:$0xff] %vm225_vm3, %v3617_v59  ;;  %v3523_v0 = vadd.f32 %v4756_v47, %v3491_v60  ;;  %v6589_v49 = vpop.f32.mrb[19].mxu0  ;;  %v3499_v47 = vld [vmem:[#allocation2 + $0x78] sm:$0xff] }
 0x2c5   : > { %3648 = vst.msk [vmem:[%s6581_s6] sm:$0xff] %vm225_vm3, %v3616_v29  ;;  %v3587_v7 = vld [vmem:[#allocation2 + $0x18] sm:$0xff]  ;;  %v3522_v21 = vadd.f32 %v4757_v28, %v3490_v8  ;;  %v4580_v25 = vpop.f32.mrb[16].mxu1  ;;  %v3498_v28 = vld [vmem:[#allocation2 + $0x70] sm:$0xff] }
 0x2c6   : > { %v3619_v24 = vmul.f32 0.015625, %v3587_v7  ;;  %v3586_v10 = vld [vmem:[#allocation2 + $0x10] sm:$0xff]  ;;  %3556 = vst.msk [vmem:[#allocation2 + $0x38] sm:$0xff] %vm225_vm3, %v3523_v0  ;;  %v4758_v2 = vadd.f32 %v4580_v25, %v4388_v44  ;;  %v3333_v50 = vpop.f32.mrb[17].mxu1 }
 0x2c7   : > { %v3618_v23 = vmul.f32 0.015625, %v3586_v10  ;;  %3555 = vst.msk [vmem:[#allocation2 + $0x30] sm:$0xff] %vm225_vm3, %v3522_v21  ;;  %v4759_v5 = vadd.f32 %v3333_v50, %v6558_v36  ;;  %v6596_v63 = vpop.f32.mrb[20].mxu0  ;;  %v3501_v10 = vld [vmem:[#allocation2 + $0x88] sm:$0xff] }
 0x2c8   : > { %3651 = vst.msk [vmem:[%s6581_s6 + $0x18] sm:$0xff] %vm225_vm3, %v3619_v24  ;;  %v3525_v20 = vadd.f32 %v4758_v2, %v3493_v54  ;;  %v6600_v33 = vpop.f32.mrb[21].mxu0 }
 0x2c9   : > { %3650 = vst.msk [vmem:[%s6581_s6 + $0x10] sm:$0xff] %vm225_vm3, %v3618_v23  ;;  %v3589_v41 = vld [vmem:[#allocation2 + $0x28] sm:$0xff]  ;;  %v3524_v38 = vadd.f32 %v4759_v5, %v3492_v22  ;;  %v4583_v44 = vpop.f32.mrb[18].mxu1  ;;  %v3500_v23 = vld [vmem:[#allocation2 + $0x80] sm:$0xff] }
 0x2ca   : > { %v3621_v14 = vmul.f32 0.015625, %v3589_v41  ;;  %v3588_v12 = vld [vmem:[#allocation2 + $0x20] sm:$0xff]  ;;  %3558 = vst.msk [vmem:[#allocation2 + $0x48] sm:$0xff] %vm225_vm3, %v3525_v20  ;;  %v4760_v36 = vadd.f32 %v4583_v44, %v6560_v6  ;;  %v3343_v17 = vpop.f32.mrb[19].mxu1 }
 0x2cb   : > { %v3620_v32 = vmul.f32 0.015625, %v3588_v12  ;;  %3557 = vst.msk [vmem:[#allocation2 + $0x40] sm:$0xff] %vm225_vm3, %v3524_v38  ;;  %v4761_v37 = vadd.f32 %v3343_v17, %v6562_v62  ;;  %v6608_v57 = vpop.f32.mrb[22].mxu0  ;;  %v3502_v17 = vld [vmem:[#allocation2 + $0x90] sm:$0xff] }
 0x2cc   : > { %3653 = vst.msk [vmem:[%s6581_s6 + $0x28] sm:$0xff] %vm225_vm3, %v3621_v14  ;;  %v3527_v58 = vadd.f32 %v4760_v36, %v3495_v53  ;;  %v6612_v56 = vpop.f32.mrb[23].mxu0  ;;  %v3503_v53 = vld [vmem:[#allocation2 + $0x98] sm:$0xff] }
 0x2cd   : > { %3652 = vst.msk [vmem:[%s6581_s6 + $0x20] sm:$0xff] %vm225_vm3, %v3620_v32  ;;  %v3591_v39 = vld [vmem:[#allocation2 + $0x38] sm:$0xff]  ;;  %v3526_v52 = vadd.f32 %v4761_v37, %v3494_v16  ;;  %v4586_v6 = vpop.f32.mrb[20].mxu1 }
 0x2ce   : > { %v3623_v34 = vmul.f32 0.015625, %v3591_v39  ;;  %v3590_v46 = vld [vmem:[#allocation2 + $0x30] sm:$0xff]  ;;  %3560 = vst.msk [vmem:[#allocation2 + $0x58] sm:$0xff] %vm225_vm3, %v3527_v58  ;;  %v4762_v62 = vadd.f32 %v4586_v6, %v6566_v27  ;;  %v3353_v19 = vpop.f32.mrb[21].mxu1 }
 0x2cf   : > { %v3622_v30 = vmul.f32 0.015625, %v3590_v46  ;;  %3559 = vst.msk [vmem:[#allocation2 + $0x50] sm:$0xff] %vm225_vm3, %v3526_v52  ;;  %v4763_v3 = vadd.f32 %v3353_v19, %v6568_v55  ;;  %v6620_v26 = vpop.f32.mrb[24].mxu0  ;;  %v3505_v52 = vld [vmem:[#allocation2 + $0xa8] sm:$0xff]  ;;  %v3504_v46 = vld [vmem:[#allocation2 + $0xa0] sm:$0xff] }
 0x2d0   : > { %3655 = vst.msk [vmem:[%s6581_s6 + $0x38] sm:$0xff] %vm225_vm3, %v3623_v34  ;;  %v3529_v61 = vadd.f32 %v4762_v62, %v3497_v9  ;;  %v6624_v60 = vpop.f32.mrb[25].mxu0 }
 0x2d1   : > { %3654 = vst.msk [vmem:[%s6581_s6 + $0x30] sm:$0xff] %vm225_vm3, %v3622_v30  ;;  %v3593_v59 = vld [vmem:[#allocation2 + $0x48] sm:$0xff]  ;;  %v3528_v27 = vadd.f32 %v4763_v3, %v3496_v13  ;;  %v4589_v18 = vpop.f32.mrb[22].mxu1 }
 0x2d2   : > { %v3625_v45 = vmul.f32 0.015625, %v3593_v59  ;;  %v3592_v8 = vld [vmem:[#allocation2 + $0x40] sm:$0xff]  ;;  %3562 = vst.msk [vmem:[#allocation2 + $0x68] sm:$0xff] %vm225_vm3, %v3529_v61  ;;  %v4764_v55 = vadd.f32 %v4589_v18, %v6572_v1  ;;  %v3363_v29 = vpop.f32.mrb[23].mxu1  ;;  %v3507_v61 = vld [vmem:[#allocation2 + $0xb8] sm:$0xff] }
 0x2d3   : > { %v3624_v0 = vmul.f32 0.015625, %v3592_v8  ;;  %3561 = vst.msk [vmem:[#allocation2 + $0x60] sm:$0xff] %vm225_vm3, %v3528_v27  ;;  %v4765_v7 = vadd.f32 %v3363_v29, %v6574_v4 }
 0x2d4   : > { %3657 = vst.msk [vmem:[%s6581_s6 + $0x48] sm:$0xff] %vm225_vm3, %v3625_v45  ;;  %v3531_v21 = vadd.f32 %v4764_v55, %v3499_v47  ;;  %v3506_v47 = vld [vmem:[#allocation2 + $0xb0] sm:$0xff] }
 0x2d5   : > { %3656 = vst.msk [vmem:[%s6581_s6 + $0x40] sm:$0xff] %vm225_vm3, %v3624_v0  ;;  %v3595_v25 = vld [vmem:[#allocation2 + $0x58] sm:$0xff]  ;;  %v3530_v54 = vadd.f32 %v4765_v7, %v3498_v28  ;;  %v4592_v24 = vpop.f32.mrb[24].mxu1  ;;  %v3509_v0 = vld [vmem:[#allocation2 + $0xc8] sm:$0xff] }
 0x2d6   : > { %v3627_v2 = vmul.f32 0.015625, %v3595_v25  ;;  %v3594_v1 = vld [vmem:[#allocation2 + $0x50] sm:$0xff]  ;;  %3564 = vst.msk [vmem:[#allocation2 + $0x78] sm:$0xff] %vm225_vm3, %v3531_v21  ;;  %v4766_v50 = vadd.f32 %v4592_v24, %v6585_v40  ;;  %v3373_v22 = vpop.f32.mrb[25].mxu1 }
 0x2d7   : > { %v3626_v4 = vmul.f32 0.015625, %v3594_v1  ;;  %3563 = vst.msk [vmem:[#allocation2 + $0x70] sm:$0xff] %vm225_vm3, %v3530_v54  ;;  %v4767_v5 = vadd.f32 %v3373_v22, %v6589_v49  ;;  %v3508_v54 = vld [vmem:[#allocation2 + $0xc0] sm:$0xff]  ;;  %v3511_v22 = vld [vmem:[#allocation2 + $0xd8] sm:$0xff] }
 0x2d8   : > { %3659 = vst.msk [vmem:[%s6581_s6 + $0x58] sm:$0xff] %vm225_vm3, %v3627_v2  ;;  %v3533_v20 = vadd.f32 %v4766_v50, %v3501_v10 }
 0x2d9   : > { %3658 = vst.msk [vmem:[%s6581_s6 + $0x50] sm:$0xff] %vm225_vm3, %v3626_v4  ;;  %v3597_v41 = vld [vmem:[#allocation2 + $0x68] sm:$0xff]  ;;  %v3532_v38 = vadd.f32 %v4767_v5, %v3500_v23  ;;  %v4595_v44 = vpop.f32.mrb[26].mxu1 }
 0x2da   : > { %v3629_v14 = vmul.f32 0.015625, %v3597_v41  ;;  %v3596_v40 = vld [vmem:[#allocation2 + $0x60] sm:$0xff]  ;;  %3566 = vst.msk [vmem:[#allocation2 + $0x88] sm:$0xff] %vm225_vm3, %v3533_v20  ;;  %v4768_v12 = vadd.f32 %v4595_v44, %v6596_v63  ;;  %v3383_v36 = vpop.f32.mrb[27].mxu1  ;;  %v3510_v20 = vld [vmem:[#allocation2 + $0xd0] sm:$0xff] }
 0x2db   : > { %v3628_v49 = vmul.f32 0.015625, %v3596_v40  ;;  %3565 = vst.msk [vmem:[#allocation2 + $0x80] sm:$0xff] %vm225_vm3, %v3532_v38  ;;  %v4769_v16 = vadd.f32 %v3383_v36, %v6600_v33  ;;  %v3513_v40 = vld [vmem:[#allocation2 + $0xe8] sm:$0xff] }
 0x2dc   : > { %3661 = vst.msk [vmem:[%s6581_s6 + $0x68] sm:$0xff] %vm225_vm3, %v3629_v14  ;;  %v3535_v32 = vadd.f32 %v4768_v12, %v3503_v53 }
 0x2dd   : > { %3660 = vst.msk [vmem:[%s6581_s6 + $0x60] sm:$0xff] %vm225_vm3, %v3628_v49  ;;  %v3599_v37 = vld [vmem:[#allocation2 + $0x78] sm:$0xff]  ;;  %v3534_v58 = vadd.f32 %v4769_v16, %v3502_v17  ;;  %v4598_v39 = vpop.f32.mrb[28].mxu1  ;;  %v3512_v49 = vld [vmem:[#allocation2 + $0xe0] sm:$0xff] }
 0x2de   : > { %v3631_v6 = vmul.f32 0.015625, %v3599_v37  ;;  %v3598_v63 = vld [vmem:[#allocation2 + $0x70] sm:$0xff]  ;;  %3568 = vst.msk [vmem:[#allocation2 + $0x98] sm:$0xff] %vm225_vm3, %v3535_v32  ;;  %v4770_v9 = vadd.f32 %v4598_v39, %v6608_v57  ;;  %v3393_v34 = vpop.f32.mrb[29].mxu1 }
 0x2df   : > { %v3630_v33 = vmul.f32 0.015625, %v3598_v63  ;;  %3567 = vst.msk [vmem:[#allocation2 + $0x90] sm:$0xff] %vm225_vm3, %v3534_v58  ;;  %v4771_v62 = vadd.f32 %v3393_v34, %v6612_v56 }
 0x2e0   : > { %3663 = vst.msk [vmem:[%s6581_s6 + $0x78] sm:$0xff] %vm225_vm3, %v3631_v6  ;;  %v3537_v19 = vadd.f32 %v4770_v9, %v3505_v52  ;;  %v3515_v52 = vld [vmem:[#allocation2 + $0xf8] sm:$0xff] }
 0x2e1   : > { %3662 = vst.msk [vmem:[%s6581_s6 + $0x70] sm:$0xff] %vm225_vm3, %v3630_v33  ;;  %v3601_v13 = vld [vmem:[#allocation2 + $0x88] sm:$0xff]  ;;  %v3536_v30 = vadd.f32 %v4771_v62, %v3504_v46  ;;  %v4601_v3 = vpop.f32.mrb[30].mxu1 }
 0x2e2   : > { %v3633_v59 = vmul.f32 0.015625, %v3601_v13  ;;  %v3600_v57 = vld [vmem:[#allocation2 + $0x80] sm:$0xff]  ;;  %3570 = vst.msk [vmem:[#allocation2 + $0xa8] sm:$0xff] %vm225_vm3, %v3537_v19  ;;  %v4772_v27 = vadd.f32 %v4601_v3, %v6620_v26  ;;  %v3403_v18 = vpop.f32.mrb[31].mxu1 }
 0x2e3   : > { %v3632_v56 = vmul.f32 0.015625, %v3600_v57  ;;  %3569 = vst.msk [vmem:[#allocation2 + $0xa0] sm:$0xff] %vm225_vm3, %v3536_v30  ;;  %v4773_v45 = vadd.f32 %v3403_v18, %v6624_v60 }
 0x2e4   : > { %3665 = vst.msk [vmem:[%s6581_s6 + $0x88] sm:$0xff] %vm225_vm3, %v3633_v59  ;;  %v3539_v8 = vadd.f32 %v4772_v27, %v3507_v61 }
 0x2e5   : > { %3664 = vst.msk [vmem:[%s6581_s6 + $0x80] sm:$0xff] %vm225_vm3, %v3632_v56  ;;  %v3603_v55 = vld [vmem:[#allocation2 + $0x98] sm:$0xff]  ;;  %v3538_v29 = vadd.f32 %v4773_v45, %v3506_v47  ;;  %v4604_v28 = vpop.f32.mrb[0].mxu1 }
 0x2e6   : > { %v3635_v7 = vmul.f32 0.015625, %v3603_v55  ;;  %v3602_v26 = vld [vmem:[#allocation2 + $0x90] sm:$0xff]  ;;  %3572 = vst.msk [vmem:[#allocation2 + $0xb8] sm:$0xff] %vm225_vm3, %v3539_v8  ;;  %v4774_v21 = vadd.f32 %v4604_v28, %v6542_v43  ;;  %v3413_v25 = vpop.f32.mrb[1].mxu1 }
 0x2e7   : > { %v3634_v60 = vmul.f32 0.015625, %v3602_v26  ;;  %3571 = vst.msk [vmem:[#allocation2 + $0xb0] sm:$0xff] %vm225_vm3, %v3538_v29  ;;  %v4775_v24 = vadd.f32 %v3413_v25, %v6544_v15 }
 0x2e8   : > { %3667 = vst.msk [vmem:[%s6581_s6 + $0x98] sm:$0xff] %vm225_vm3, %v3635_v7  ;;  %v3541_v10 = vadd.f32 %v4774_v21, %v3509_v0 }
 0x2e9   : > { %3666 = vst.msk [vmem:[%s6581_s6 + $0x90] sm:$0xff] %vm225_vm3, %v3634_v60  ;;  %v3605_v2 = vld [vmem:[#allocation2 + $0xa8] sm:$0xff]  ;;  %v3540_v1 = vadd.f32 %v4775_v24, %v3508_v54  ;;  %v4607_v50 = vpop.f32.mrb[2].mxu1 }
 0x2ea   : > { %v3637_v23 = vmul.f32 0.015625, %v3605_v2  ;;  %v3604_v43 = vld [vmem:[#allocation2 + $0xa0] sm:$0xff]  ;;  %3574 = vst.msk [vmem:[#allocation2 + $0xc8] sm:$0xff] %vm225_vm3, %v3541_v10  ;;  %v4776_v4 = vadd.f32 %v4607_v50, %v6546_v42  ;;  %v3423_v5 = vpop.f32.mrb[3].mxu1 }
 0x2eb   : > { %v3636_v15 = vmul.f32 0.015625, %v3604_v43  ;;  %3573 = vst.msk [vmem:[#allocation2 + $0xc0] sm:$0xff] %vm225_vm3, %v3540_v1  ;;  %v4777_v41 = vadd.f32 %v3423_v5, %v6548_v31 }
 0x2ec   : > { %3669 = vst.msk [vmem:[%s6581_s6 + $0xa8] sm:$0xff] %vm225_vm3, %v3637_v23  ;;  %v3543_v38 = vadd.f32 %v4776_v4, %v3511_v22 }
 0x2ed   : > { %3668 = vst.msk [vmem:[%s6581_s6 + $0xa0] sm:$0xff] %vm225_vm3, %v3636_v15  ;;  %v3607_v44 = vld [vmem:[#allocation2 + $0xb8] sm:$0xff]  ;;  %v3542_v53 = vadd.f32 %v4777_v41, %v3510_v20  ;;  %v4610_v14 = vpop.f32.mrb[4].mxu1 }
 0x2ee   : > { %v3639_v12 = vmul.f32 0.015625, %v3607_v44  ;;  %v3606_v42 = vld [vmem:[#allocation2 + $0xb0] sm:$0xff]  ;;  %3576 = vst.msk [vmem:[#allocation2 + $0xd8] sm:$0xff] %vm225_vm3, %v3543_v38  ;;  %v4778_v36 = vadd.f32 %v4610_v14, %v6550_v51  ;;  %v3433_v17 = vpop.f32.mrb[5].mxu1 }
 0x2ef   : > { %v3638_v31 = vmul.f32 0.015625, %v3606_v42  ;;  %3575 = vst.msk [vmem:[#allocation2 + $0xd0] sm:$0xff] %vm225_vm3, %v3542_v53  ;;  %v4779_v16 = vadd.f32 %v3433_v17, %v6552_v11  ;;  %v3514_v11 = vld [vmem:[#allocation2 + $0xf0] sm:$0xff] }
 0x2f0   : > { %3671 = vst.msk [vmem:[%s6581_s6 + $0xb8] sm:$0xff] %vm225_vm3, %v3639_v12  ;;  %v3545_v32 = vadd.f32 %v4778_v36, %v3513_v40 }
 0x2f1   : > { %3670 = vst.msk [vmem:[%s6581_s6 + $0xb0] sm:$0xff] %vm225_vm3, %v3638_v31  ;;  %v3609_v37 = vld [vmem:[#allocation2 + $0xc8] sm:$0xff]  ;;  %v3544_v58 = vadd.f32 %v4779_v16, %v3512_v49  ;;  %v4613_v39 = vpop.f32.mrb[6].mxu1 }
 0x2f2   : > { %v3641_v6 = vmul.f32 0.015625, %v3609_v37  ;;  %v3608_v51 = vld [vmem:[#allocation2 + $0xc0] sm:$0xff]  ;;  %3578 = vst.msk [vmem:[#allocation2 + $0xe8] sm:$0xff] %vm225_vm3, %v3545_v32  ;;  %v4780_v63 = vadd.f32 %v4613_v39, %v6554_v35  ;;  %v3443_v9 = vpop.f32.mrb[7].mxu1 }
 0x2f3   : > { %v3640_v34 = vmul.f32 0.015625, %v3608_v51  ;;  %3577 = vst.msk [vmem:[#allocation2 + $0xe0] sm:$0xff] %vm225_vm3, %v3544_v58  ;;  %v4781_v46 = vadd.f32 %v3443_v9, %v6556_v48 }
 0x2f4   : > { %3673 = vst.msk [vmem:[%s6581_s6 + $0xc8] sm:$0xff] %vm225_vm3, %v3641_v6  ;;  %v3547_v33 = vadd.f32 %v4780_v63, %v3515_v52 }
 0x2f5   : > { %3672 = vst.msk [vmem:[%s6581_s6 + $0xc0] sm:$0xff] %vm225_vm3, %v3640_v34  ;;  %v3611_v62 = vld [vmem:[#allocation2 + $0xd8] sm:$0xff]  ;;  %v3546_v19 = vadd.f32 %v4781_v46, %v3514_v11 }
 0x2f6   : > { %v3643_v13 = vmul.f32 0.015625, %v3611_v62  ;;  %v3610_v35 = vld [vmem:[#allocation2 + $0xd0] sm:$0xff]  ;;  %3580 = vst.msk [vmem:[#allocation2 + $0xf8] sm:$0xff] %vm225_vm3, %v3547_v33 }
 0x2f7   : > { %v3642_v30 = vmul.f32 0.015625, %v3610_v35  ;;  %3579 = vst.msk [vmem:[#allocation2 + $0xf0] sm:$0xff] %vm225_vm3, %v3546_v19 }
 0x2f8   : > { %3675 = vst.msk [vmem:[%s6581_s6 + $0xd8] sm:$0xff] %vm225_vm3, %v3643_v13 }
 0x2f9   : > { %3674 = vst.msk [vmem:[%s6581_s6 + $0xd0] sm:$0xff] %vm225_vm3, %v3642_v30  ;;  %v3613_v48 = vld [vmem:[#allocation2 + $0xe8] sm:$0xff] }
 0x2fa   : > { %v3645_v3 = vmul.f32 0.015625, %v3613_v48  ;;  %v3612_v61 = vld [vmem:[#allocation2 + $0xe0] sm:$0xff] }
 0x2fb   : > { %v3644_v59 = vmul.f32 0.015625, %v3612_v61 }
 0x2fc   : > { %3677 = vst.msk [vmem:[%s6581_s6 + $0xe8] sm:$0xff] %vm225_vm3, %v3645_v3 }
 0x2fd   : > { %3676 = vst.msk [vmem:[%s6581_s6 + $0xe0] sm:$0xff] %vm225_vm3, %v3644_v59  ;;  %v3615_v57 = vld [vmem:[#allocation2 + $0xf8] sm:$0xff] }
 0x2fe   : > { %v3647_v27 = vmul.f32 0.015625, %v3615_v57  ;;  %v3614_v18 = vld [vmem:[#allocation2 + $0xf0] sm:$0xff] }
 0x2ff   : > { %v3646_v47 = vmul.f32 0.015625, %v3614_v18 }
 0x300   : > { %3679 = vst.msk [vmem:[%s6581_s6 + $0xf8] sm:$0xff] %vm225_vm3, %v3647_v27 }
 0x301   : > { %3678 = vst.msk [vmem:[%s6581_s6 + $0xf0] sm:$0xff] %vm225_vm3, %v3646_v47 }
 0x302 PF: > { %s14_s17 = sadd.s32 1, %s4964_s17   ;;  %s7078_s15 = smov %s4960_s16 }
 0x303   : > { %p11_p5 = scmp.ge.s32.totalorder %s14_s17, 4   ;;  %s7079_s16 = smov %s7081_s18 }
 0x305   :  { %13 = sbr.rel (!%p11_p5) target bundleno = 2 (0x2), region = 74 }

</bundles_post_ra>
